<compile_context>
chip_gen: v6e
topology: v6e:2x2x1
jax: 0.10.0
libtpu: 0.0.40
codegen_flags: <defaults>
</compile_context>

<pallas_src>
import jax
import jax.numpy as jnp
from jax.experimental import pallas as pl
from jax.experimental.pallas import tpu as pltpu

HIDDEN = 512
LANE = 128
_MIN_GRID_STEPS = 4  # v7x has 2 TCs; "parallel" grid sharding wants >= 2 steps per core.


def _round_up(x, m):
    return (x + m - 1) // m * m


def _vmem_capacity_bytes():
    """Per-core VMEM capacity (128 MiB on v5e/v6e, 64 MiB on v7x)."""
    try:
        return int(pltpu.get_tpu_info().vmem_capacity_bytes)
    except Exception:  # conservative fallback: assume the smallest (v7x) VMEM
        return 64 * 2**20


# Grid-invariant operands are requested single-buffered (Buffered(1)); if this
# JAX build rejects the request we fall back once, globally, to default specs.
_SINGLE_BUFFER_OK = [hasattr(pl, "Buffered")]


def _invariant_spec(block_shape, index_map, single_buffer):
    if single_buffer:
        return pl.BlockSpec(block_shape, index_map, pipeline_mode=pl.Buffered(1))
    return pl.BlockSpec(block_shape, index_map)


# --------------------------------------------------------------------------- #
# Kernels
# --------------------------------------------------------------------------- #
def _expert_kernel(x_ref, w1_ref, b1_ref, w2_ref, b2_ref, o_ref):
    """Whole-dim fused path: (x @ W1 + b1) -> ReLU -> (@ W2 + b2)."""
    h = jnp.dot(x_ref[...], w1_ref[...], preferred_element_type=jnp.float32)
    h = jnp.maximum(h + b1_ref[...], 0.0)            # (tile_b, 512) + (1, 512), f32
    h = h.astype(w2_ref.dtype)                       # single deliberate cast
    y = jnp.dot(h, w2_ref[...], preferred_element_type=jnp.float32)
    o_ref[...] = (y + b2_ref[...]).astype(o_ref.dtype)


def _expert_kernel_ktiled(x_ref, w1_ref, b1_ref, w2_ref, b2_ref, o_ref, acc_ref):
    """K-tiled path for large `dim`: accumulate matmul-1 into f32 VMEM scratch."""
    k = pl.program_id(1)

    @pl.when(k == 0)
    def _():
        acc_ref[...] = jnp.zeros_like(acc_ref)

    acc_ref[...] += jnp.dot(x_ref[...], w1_ref[...],
                            preferred_element_type=jnp.float32)

    @pl.when(k == pl.num_programs(1) - 1)
    def _():
        h = jnp.maximum(acc_ref[...] + b1_ref[...], 0.0).astype(w2_ref.dtype)
        y = jnp.dot(h, w2_ref[...], preferred_element_type=jnp.float32)
        o_ref[...] = (y + b2_ref[...]).astype(o_ref.dtype)


# --------------------------------------------------------------------------- #
# Wrapper
# --------------------------------------------------------------------------- #
def expert_forward(x, w1, b1, w2, b2, *, tile_b=512, tile_k=None,
                   compute_dtype=None, out_dtype=None, force_k_tiling=False):
    """Fused Linear(dim->512) -> ReLU -> Linear(512->output_dim).

    x:  (B, dim);  w1: (dim, 512);  b1: (512,);  w2: (512, out);  b2: (out,)
    compute_dtype: MXU operand dtype; defaults to bfloat16 for f32 inputs
        (accumulation, bias add and ReLU stay in f32). Pass jnp.float32 for
        exact f32 operands.
    out_dtype: output storage dtype (default x.dtype); bf16 halves output
        store / HBM writeback traffic on store-bound shapes (notably v5e).
    """
    B, dim = x.shape
    out_dim = w2.shape[1]
    assert w1.shape == (dim, HIDDEN) and w2.shape[0] == HIDDEN

    out_dtype = jnp.dtype(x.dtype if out_dtype is None else out_dtype)
    if compute_dtype is None:
        compute_dtype = jnp.bfloat16 if x.dtype == jnp.float32 else x.dtype
    compute_dtype = jnp.dtype(compute_dtype)
    c_item = compute_dtype.itemsize
    o_item = out_dtype.itemsize

    # No HBM padding of x / output: full-`dim` and full-`out_dim` blocks are
    # legal (block dim == array dim), avoiding extra read+write passes.
    x_c = x.astype(compute_dtype)
    w1_c = w1.astype(compute_dtype)
    w2_c = w2.astype(compute_dtype)
    b1_c = jnp.reshape(b1, (1, HIDDEN)).astype(jnp.float32)
    b2_c = jnp.reshape(b2, (1, out_dim)).astype(jnp.float32)

    align = 16 if c_item == 2 else 8               # sublane alignment of batch tiles
    vmem_cap = _vmem_capacity_bytes()
    vmem_budget = int(0.8 * vmem_cap)
    wbuf = 1 if _SINGLE_BUFFER_OK[0] else 2        # buffers held for invariant operands

    # ---- batch tile selection ----------------------------------------------
    tile_b = max(1, min(tile_b, B))
    if tile_b < B:
        tile_b = max(align, (tile_b // align) * align)
    # Guarantee several grid steps when the batch allows it: gives the x/out DMA
    # pipeline something to overlap with, and >= 2 steps per TensorCore on v7x.
    if B >= _MIN_GRID_STEPS * align and pl.cdiv(B, tile_b) < _MIN_GRID_STEPS:
        tile_b = _round_up(pl.cdiv(B, _MIN_GRID_STEPS), align)

    def _resident_fused(tb):
        return (2 * tb * dim * c_item                                  # x tiles
                + 2 * tb * out_dim * o_item                            # out tiles
                + wbuf * (dim * HIDDEN + HIDDEN * out_dim) * c_item    # W1, W2
                + wbuf * (HIDDEN + out_dim) * 4                        # biases (f32)
                + tb * HIDDEN * 4)                                     # f32 activation h

    use_k_tiling = force_k_tiling or _resident_fused(align) > 0.6 * vmem_cap

    if not use_k_tiling:
        while _resident_fused(tile_b) > vmem_budget and tile_b > align:
            tile_b = max(align, _round_up(tile_b // 2, align))
        resident = _resident_fused(tile_b)

        grid = (pl.cdiv(B, tile_b),)
        dims = ("parallel",)
        kernel = _expert_kernel
        scratch = []
        x_in, w1_in = x_c, w1_c

        def _in_specs(sb):
            return [
                pl.BlockSpec((tile_b, dim), lambda i: (i, 0)),              # x tile
                _invariant_spec((dim, HIDDEN), lambda i: (0, 0), sb),       # W1
                _invariant_spec((1, HIDDEN), lambda i: (0, 0), sb),         # b1
                _invariant_spec((HIDDEN, out_dim), lambda i: (0, 0), sb),   # W2
                _invariant_spec((1, out_dim), lambda i: (0, 0), sb),        # b2
            ]

        out_specs = pl.BlockSpec((tile_b, out_dim), lambda i: (i, 0))
    else:
        # W1 does not fit comfortably in VMEM (e.g. very large `dim` on v7x's
        # 64 MiB): stream it in K tiles, accumulate matmul-1 into f32 scratch.
        if tile_k is None:
            tile_k = 2048 if c_item == 2 else 1024
        tile_k = min(_round_up(tile_k, LANE), _round_up(dim, LANE))

        def _resident_k(tb, tk):
            return (2 * tb * tk * c_item                  # x (i, k) tiles
                    + 2 * tk * HIDDEN * c_item            # W1 K-tiles (double buffered)
                    + wbuf * HIDDEN * out_dim * c_item    # W2 resident
                    + wbuf * (HIDDEN + out_dim) * 4       # biases
                    + tb * HIDDEN * 4                     # f32 accumulator scratch
                    + 2 * tb * out_dim * o_item)          # out tiles

        while _resident_k(tile_b, tile_k) > vmem_budget and tile_k > LANE:
            tile_k = max(LANE, _round_up(tile_k // 2, LANE))
        while _resident_k(tile_b, tile_k) > vmem_budget and tile_b > align:
            tile_b = max(align, _round_up(tile_b // 2, align))
        resident = _resident_k(tile_b, tile_k)

        # Zero-pad K up to a multiple of tile_k (exact: padded rows/cols are 0).
        dim_p = _round_up(dim, tile_k)
        x_in = jnp.pad(x_c, ((0, 0), (0, dim_p - dim))) if dim_p != dim else x_c
        w1_in = jnp.pad(w1_c, ((0, dim_p - dim), (0, 0))) if dim_p != dim else w1_c

        grid = (pl.cdiv(B, tile_b), dim_p // tile_k)
        dims = ("parallel", "arbitrary")
        kernel = _expert_kernel_ktiled
        scratch = [pltpu.VMEM((tile_b, HIDDEN), jnp.float32)]

        def _in_specs(sb):
            return [
                pl.BlockSpec((tile_b, tile_k), lambda i, k: (i, k)),           # x tile
                pl.BlockSpec((tile_k, HIDDEN), lambda i, k: (k, 0)),           # W1 K-tile
                _invariant_spec((1, HIDDEN), lambda i, k: (0, 0), sb),         # b1
                _invariant_spec((HIDDEN, out_dim), lambda i, k: (0, 0), sb),   # W2
                _invariant_spec((1, out_dim), lambda i, k: (0, 0), sb),        # b2
            ]

        out_specs = pl.BlockSpec((tile_b, out_dim), lambda i, k: (i, 0))

    # ---- scheduling hints -----------------------------------------------------
    flops = 2 * B * (dim * HIDDEN + HIDDEN * out_dim)
    bytes_accessed = (x_c.size * c_item + (w1_c.size + w2_c.size) * c_item
                      + (b1_c.size + b2_c.size) * 4 + B * out_dim * o_item)
    cost = pl.CostEstimate(flops=flops, transcendentals=0,
                           bytes_accessed=bytes_accessed)
    # Per-generation, per-core VMEM budget.  `resident` already itemizes every
    # buffer (x/out double-buffered, weights wbuf-buffered) so no extra hedge;
    # on v7x the grid is core-sharded and weights are counted once per core.
    vmem_limit = int(min(vmem_budget, max(resident + (4 << 20), 32 << 20)))

    def _run(single_buffer):
        return pl.pallas_call(
            kernel,
            out_shape=jax.ShapeDtypeStruct((B, out_dim), out_dtype),
            grid_spec=pltpu.PrefetchScalarGridSpec(
                num_scalar_prefetch=0,
                grid=grid,
                in_specs=_in_specs(single_buffer),
                out_specs=out_specs,
                scratch_shapes=scratch,
            ),
            compiler_params=pltpu.CompilerParams(
                dimension_semantics=dims,
                vmem_limit_bytes=vmem_limit,
            ),
            cost_estimate=cost,
        )(x_in, w1_in, b1_c, w2_c, b2_c)

    if _SINGLE_BUFFER_OK[0]:
        try:
            return _run(True)
        except Exception:
            # pipeline_mode=pl.Buffered(1) not accepted by this JAX/Mosaic build:
            # fall back (once, globally) to default double-buffered specs.
            _SINGLE_BUFFER_OK[0] = False
    return _run(False)


def init_expert_params(key, dim, output_dim, dtype=jnp.float32):
    """Deterministic init mirroring torch nn.Linear: U(-1/sqrt(in), 1/sqrt(in))."""
    k1, k2, k3, k4 = jax.random.split(key, 4)
    bound1 = 1.0 / jnp.sqrt(dim)
    bound2 = 1.0 / jnp.sqrt(HIDDEN)
    w1 = jax.random.uniform(k1, (dim, HIDDEN), dtype, -bound1, bound1)
    b1 = jax.random.uniform(k2, (HIDDEN,), dtype, -bound1, bound1)
    w2 = jax.random.uniform(k3, (HIDDEN, output_dim), dtype, -bound2, bound2)
    b2 = jax.random.uniform(k4, (output_dim,), dtype, -bound2, bound2)
    return w1, b1, w2, b2


if __name__ == "__main__":
    key = jax.random.PRNGKey(0)
    k_x, k_p, k_x2, k_p2 = jax.random.split(key, 4)

    # Small but non-degenerate shapes: multi-step "parallel" grid (384 rows ->
    # 4 batch tiles), unaligned dim (64) and out_dim (96) exercising the
    # full-dim block / masked-store path with no HBM padding passes.
    batch, dim, output_dim = 384, 64, 96
    x = jax.random.normal(k_x, (batch, dim), jnp.float32)
    w1, b1, w2, b2 = init_expert_params(k_p, dim, output_dim)

    # Reference in plain JAX.
    ref = jnp.maximum(x @ w1 + b1[None, :], 0.0) @ w2 + b2[None, :]

    # Exact f32-operand path (opt-out of the bf16 default).
    y32 = jax.block_until_ready(
        expert_forward(x, w1, b1, w2, b2, compute_dtype=jnp.float32))
    assert y32.shape == (batch, output_dim)
    assert jnp.allclose(y32, ref, atol=1e-5, rtol=1e-5)

    # Default path: bf16 MXU operands, f32 accumulation (recommended everywhere).
    y16 = jax.block_until_ready(expert_forward(x, w1, b1, w2, b2))
    assert y16.shape == (batch, output_dim)
    assert jnp.allclose(y16, ref, atol=1e-1, rtol=1e-1)

    # K-tiled accumulator path (normally auto-enabled only when W1 would blow
    # the per-generation VMEM budget, e.g. very large `dim` on v7x's 64 MiB);
    # forced at a tiny size here so the init/accumulate/finalize pipeline runs.
    batch2, dim2, out2 = 160, 256, 96
    x2 = jax.random.normal(k_x2, (batch2, dim2), jnp.float32)
    p2 = init_expert_params(k_p2, dim2, out2)
    ref2 = jnp.maximum(x2 @ p2[0] + p2[1][None, :], 0.0) @ p2[2] + p2[3][None, :]
    y2 = jax.block_until_ready(
        expert_forward(x2, *p2, compute_dtype=jnp.float32,
                       force_k_tiling=True, tile_k=128))
    assert y2.shape == (batch2, out2)
    assert jnp.allclose(y2, ref2, atol=1e-4, rtol=1e-4)

    print("KERNEL_OK")
</pallas_src>

<mosaic_0001>
module attributes {stable_mosaic.version = 11 : i64} {
  func.func @_expert_kernel(%arg0: i32, %arg1: memref<96x64xf32, #tpu.memory_space<vmem>>, %arg2: memref<64x512xf32, #tpu.memory_space<vmem>>, %arg3: memref<1x512xf32, #tpu.memory_space<vmem>>, %arg4: memref<512x96xf32, #tpu.memory_space<vmem>>, %arg5: memref<1x96xf32, #tpu.memory_space<vmem>>, %arg6: memref<96x96xf32, #tpu.memory_space<vmem>>) attributes {dimension_semantics = [#tpu.dimension_semantics<parallel>], iteration_bounds = array<i64: 4>, scalar_prefetch = 0 : i64, scratch_operands = 0 : i64, tpu.core_type = #tpu.core_type<tc>, window_params = [{transform_indices = @transform_0, window_bounds = array<i64: 96, 64>}, {pipeline_mode = #tpu.pipeline_mode<synchronous>, transform_indices = @transform_1, window_bounds = array<i64: 64, 512>}, {pipeline_mode = #tpu.pipeline_mode<synchronous>, transform_indices = @transform_2, window_bounds = array<i64: 1, 512>}, {pipeline_mode = #tpu.pipeline_mode<synchronous>, transform_indices = @transform_3, window_bounds = array<i64: 512, 96>}, {pipeline_mode = #tpu.pipeline_mode<synchronous>, transform_indices = @transform_4, window_bounds = array<i64: 1, 96>}, {transform_indices = @transform_5, window_bounds = array<i64: 96, 96>}]} {
    %c0 = arith.constant 0 : index
    %c0_0 = arith.constant 0 : index
    %0 = vector.load %arg1[%c0, %c0_0] : memref<96x64xf32, #tpu.memory_space<vmem>>, vector<96x64xf32>
    %c0_1 = arith.constant 0 : index
    %c0_2 = arith.constant 0 : index
    %1 = vector.load %arg2[%c0_1, %c0_2] : memref<64x512xf32, #tpu.memory_space<vmem>>, vector<64x512xf32>
    %cst = arith.constant dense<0.000000e+00> : vector<96x512xf32>
    %2 = tpu.matmul %0, %1, %cst {dimension_numbers = #tpu.dot_dimension_numbers<[1], [0], [0], [1], [0, 0, 1, 1], [], []>} : vector<96x64xf32>, vector<64x512xf32>, vector<96x512xf32> -> vector<96x512xf32>
    %c0_3 = arith.constant 0 : index
    %c0_4 = arith.constant 0 : index
    %3 = vector.load %arg3[%c0_3, %c0_4] : memref<1x512xf32, #tpu.memory_space<vmem>>, vector<1x512xf32>
    %4 = vector.broadcast %3 : vector<1x512xf32> to vector<96x512xf32>
    %5 = arith.addf %2, %4 : vector<96x512xf32>
    %cst_5 = arith.constant 0.000000e+00 : f32
    %6 = vector.broadcast %cst_5 : f32 to vector<96x512xf32>
    %7 = arith.maximumf %5, %6 : vector<96x512xf32>
    %c0_6 = arith.constant 0 : index
    %c0_7 = arith.constant 0 : index
    %8 = vector.load %arg4[%c0_6, %c0_7] : memref<512x96xf32, #tpu.memory_space<vmem>>, vector<512x96xf32>
    %cst_8 = arith.constant dense<0.000000e+00> : vector<96x96xf32>
    %9 = tpu.matmul %7, %8, %cst_8 {dimension_numbers = #tpu.dot_dimension_numbers<[1], [0], [0], [1], [0, 0, 1, 1], [], []>} : vector<96x512xf32>, vector<512x96xf32>, vector<96x96xf32> -> vector<96x96xf32>
    %c0_9 = arith.constant 0 : index
    %c0_10 = arith.constant 0 : index
    %10 = vector.load %arg5[%c0_9, %c0_10] : memref<1x96xf32, #tpu.memory_space<vmem>>, vector<1x96xf32>
    %11 = vector.broadcast %10 : vector<1x96xf32> to vector<96x96xf32>
    %12 = arith.addf %9, %11 : vector<96x96xf32>
    %c0_11 = arith.constant 0 : index
    %c0_12 = arith.constant 0 : index
    %13 = vector.load %arg6[%c0_11, %c0_12] : memref<96x96xf32, #tpu.memory_space<vmem>>, vector<96x96xf32>
    tpu.vector_store %arg6[%c0_11, %c0_12], %12 {strides = array<i32>} : memref<96x96xf32, #tpu.memory_space<vmem>>, vector<96x96xf32>,
    return
  }
  func.func @transform_0(%arg0: i32) -> (i32, i32) {
    %c0_i32 = arith.constant 0 : i32
    %c0_i32_0 = arith.constant 0 : i32
    return %arg0, %c0_i32 : i32, i32
  }
  func.func @transform_1(%arg0: i32) -> (i32, i32) {
    %c0_i32 = arith.constant 0 : i32
    %c0_i32_0 = arith.constant 0 : i32
    %c0_i32_1 = arith.constant 0 : i32
    return %c0_i32, %c0_i32_0 : i32, i32
  }
  func.func @transform_2(%arg0: i32) -> (i32, i32) {
    %c0_i32 = arith.constant 0 : i32
    %c0_i32_0 = arith.constant 0 : i32
    %c0_i32_1 = arith.constant 0 : i32
    return %c0_i32, %c0_i32_0 : i32, i32
  }
  func.func @transform_3(%arg0: i32) -> (i32, i32) {
    %c0_i32 = arith.constant 0 : i32
    %c0_i32_0 = arith.constant 0 : i32
    %c0_i32_1 = arith.constant 0 : i32
    return %c0_i32, %c0_i32_0 : i32, i32
  }
  func.func @transform_4(%arg0: i32) -> (i32, i32) {
    %c0_i32 = arith.constant 0 : i32
    %c0_i32_0 = arith.constant 0 : i32
    %c0_i32_1 = arith.constant 0 : i32
    return %c0_i32, %c0_i32_0 : i32, i32
  }
  func.func @transform_5(%arg0: i32) -> (i32, i32) {
    %c0_i32 = arith.constant 0 : i32
    %c0_i32_0 = arith.constant 0 : i32
    return %arg0, %c0_i32 : i32, i32
  }
}

module attributes {stable_mosaic.version = 11 : i64} {
  func.func @_expert_kernel(%arg0: i32, %arg1: memref<96x64xf32, #tpu.memory_space<vmem>>, %arg2: memref<64x512xf32, #tpu.memory_space<vmem>>, %arg3: memref<1x512xf32, #tpu.memory_space<vmem>>, %arg4: memref<512x96xf32, #tpu.memory_space<vmem>>, %arg5: memref<1x96xf32, #tpu.memory_space<vmem>>, %arg6: memref<96x96xf32, #tpu.memory_space<vmem>>) attributes {dimension_semantics = [#tpu.dimension_semantics<parallel>], iteration_bounds = array<i64: 4>, scalar_prefetch = 0 : i64, scratch_operands = 0 : i64, tpu.core_type = #tpu.core_type<tc>, window_params = [{transform_indices = @transform_0, window_bounds = array<i64: 96, 64>}, {pipeline_mode = #tpu.pipeline_mode<synchronous>, transform_indices = @transform_1, window_bounds = array<i64: 64, 512>}, {pipeline_mode = #tpu.pipeline_mode<synchronous>, transform_indices = @transform_2, window_bounds = array<i64: 1, 512>}, {pipeline_mode = #tpu.pipeline_mode<synchronous>, transform_indices = @transform_3, window_bounds = array<i64: 512, 96>}, {pipeline_mode = #tpu.pipeline_mode<synchronous>, transform_indices = @transform_4, window_bounds = array<i64: 1, 96>}, {transform_indices = @transform_5, window_bounds = array<i64: 96, 96>}]} {
    %c0 = arith.constant 0 : index
    %c0_0 = arith.constant 0 : index
    %0 = vector.load %arg1[%c0, %c0_0] : memref<96x64xf32, #tpu.memory_space<vmem>>, vector<96x64xf32>
    %c0_1 = arith.constant 0 : index
    %c0_2 = arith.constant 0 : index
    %1 = vector.load %arg2[%c0_1, %c0_2] : memref<64x512xf32, #tpu.memory_space<vmem>>, vector<64x512xf32>
    %cst = arith.constant dense<0.000000e+00> : vector<96x512xf32>
    %2 = tpu.matmul %0, %1, %cst {dimension_numbers = #tpu.dot_dimension_numbers<[1], [0], [0], [1], [0, 0, 1, 1], [], []>} : vector<96x64xf32>, vector<64x512xf32>, vector<96x512xf32> -> vector<96x512xf32>
    %c0_3 = arith.constant 0 : index
    %c0_4 = arith.constant 0 : index
    %3 = vector.load %arg3[%c0_3, %c0_4] : memref<1x512xf32, #tpu.memory_space<vmem>>, vector<1x512xf32>
    %4 = vector.broadcast %3 : vector<1x512xf32> to vector<96x512xf32>
    %5 = arith.addf %2, %4 : vector<96x512xf32>
    %cst_5 = arith.constant 0.000000e+00 : f32
    %6 = vector.broadcast %cst_5 : f32 to vector<96x512xf32>
    %7 = arith.maximumf %5, %6 : vector<96x512xf32>
    %c0_6 = arith.constant 0 : index
    %c0_7 = arith.constant 0 : index
    %8 = vector.load %arg4[%c0_6, %c0_7] : memref<512x96xf32, #tpu.memory_space<vmem>>, vector<512x96xf32>
    %cst_8 = arith.constant dense<0.000000e+00> : vector<96x96xf32>
    %9 = tpu.matmul %7, %8, %cst_8 {dimension_numbers = #tpu.dot_dimension_numbers<[1], [0], [0], [1], [0, 0, 1, 1], [], []>} : vector<96x512xf32>, vector<512x96xf32>, vector<96x96xf32> -> vector<96x96xf32>
    %c0_9 = arith.constant 0 : index
    %c0_10 = arith.constant 0 : index
    %10 = vector.load %arg5[%c0_9, %c0_10] : memref<1x96xf32, #tpu.memory_space<vmem>>, vector<1x96xf32>
    %11 = vector.broadcast %10 : vector<1x96xf32> to vector<96x96xf32>
    %12 = arith.addf %9, %11 : vector<96x96xf32>
    %c0_11 = arith.constant 0 : index
    %c0_12 = arith.constant 0 : index
    %13 = vector.load %arg6[%c0_11, %c0_12] : memref<96x96xf32, #tpu.memory_space<vmem>>, vector<96x96xf32>
    tpu.vector_store %arg6[%c0_11, %c0_12], %12 {strides = array<i32>} : memref<96x96xf32, #tpu.memory_space<vmem>>, vector<96x96xf32>,
    return
  }
  func.func @transform_0(%arg0: i32) -> (i32, i32) {
    %c0_i32 = arith.constant 0 : i32
    %c0_i32_0 = arith.constant 0 : i32
    return %arg0, %c0_i32 : i32, i32
  }
  func.func @transform_1(%arg0: i32) -> (i32, i32) {
    %c0_i32 = arith.constant 0 : i32
    %c0_i32_0 = arith.constant 0 : i32
    %c0_i32_1 = arith.constant 0 : i32
    return %c0_i32, %c0_i32_0 : i32, i32
  }
  func.func @transform_2(%arg0: i32) -> (i32, i32) {
    %c0_i32 = arith.constant 0 : i32
    %c0_i32_0 = arith.constant 0 : i32
    %c0_i32_1 = arith.constant 0 : i32
    return %c0_i32, %c0_i32_0 : i32, i32
  }
  func.func @transform_3(%arg0: i32) -> (i32, i32) {
    %c0_i32 = arith.constant 0 : i32
    %c0_i32_0 = arith.constant 0 : i32
    %c0_i32_1 = arith.constant 0 : i32
    return %c0_i32, %c0_i32_0 : i32, i32
  }
  func.func @transform_4(%arg0: i32) -> (i32, i32) {
    %c0_i32 = arith.constant 0 : i32
    %c0_i32_0 = arith.constant 0 : i32
    %c0_i32_1 = arith.constant 0 : i32
    return %c0_i32, %c0_i32_0 : i32, i32
  }
  func.func @transform_5(%arg0: i32) -> (i32, i32) {
    %c0_i32 = arith.constant 0 : i32
    %c0_i32_0 = arith.constant 0 : i32
    return %arg0, %c0_i32 : i32, i32
  }
}

</mosaic_0001>

<bundles_post_ra>
// kernel: tpu_custom_call.1
= control target key start
LH: loop header
LB: loop body
LE: loop exit
PB: predicated region body
PF: predicated region fallthrough
CT: control target
= control target key end

     0   :  { %s1261_s18 = smov 0   ;;  %s1738_s0 = inlined_call_operand.vmem [shape: f32[384,64], index: 0, kind: input, shape index: {}]   ;;  %s1739_s1 = inlined_call_operand.vmem [shape: f32[64,512], index: 1, kind: input, shape index: {}]   ;;  %s1740_s2 = inlined_call_operand.vmem [shape: f32[1,512], index: 2, kind: input, shape index: {}]   ;;  %s1741_s3 = inlined_call_operand.vmem [shape: f32[512,96], index: 3, kind: input, shape index: {}]   ;;  %s1742_s4 = inlined_call_operand.vmem [shape: f32[1,96], index: 4, kind: input, shape index: {}]   ;;  %s1743_s5 = inlined_call_operand.vmem [shape: f32[384,96], index: 5, kind: output, shape index: {}]  }
   0x1 LB: > { %s1043_s19 = sadd.s32 4294967295, %s1228_s18   ;;  %p1047_p0 = scmp.ge.s32.totalorder %s1228_s18, 1  ;;  %s1228_s18 = sphi %s1261_s18, %s15_s18  }
   0x2   : > { %p188_p1 = scmp.lt.s32.totalorder %s1228_s18, 5 }
   0x4   : > { %p189_p2 = pnand %p1047_p0, %p188_p1 }
   0x5   : > { %s216_s26 = smul.u32 (!%p189_p2), 12, %s1043_s19 }
   0x6   : > { %192 = sbr.rel (%p189_p2) target bundleno = 475 (0x1db), region = 40 }
   0x7   : > { %p217_p3 = scmp.lt.s32.totalorder (!%p189_p2), %s216_s26, 47 }
   0xb   : > { %v269_v0 = vld [vmem:[%s1739_s1 + $0xe8] sm:$0xff]  ;;  %v271_v1 = vld [vmem:[%s1739_s1 + $0xf8] sm:$0xff]  ;;  %v268_v2 = vld [vmem:[%s1739_s1 + $0xe0] sm:$0xff]  ;;  %s1745_s26 = smov (!%p217_p3, %s216_s26), 47  ;;  %vm294_vm0 = vcmask 523264   ;;  %v1230_v33 = vmov 0.0  }
   0xc   : > { %347 = vmatprep.subr.mxu0 %v269_v0  ;;  %484 = vmatprep.subr.mxu1 %v271_v1  ;;  %v270_v3 = vld [vmem:[%s1739_s1 + $0xf0] sm:$0xff]  ;;  %v265_v4 = vld [vmem:[%s1739_s1 + $0xc8] sm:$0xff]  ;;  %v267_v5 = vld [vmem:[%s1739_s1 + $0xd8] sm:$0xff]  ;;  %s1048_s22 = sshll.u32 %s1745_s26, 3  ;;  %vm974_vm1 = vcmask 785408  }
   0xd   : > { %348 = vmatpush1.msra.mxu0 %v268_v2  ;;  %485 = vmatpush1.msra.mxu1 %v270_v3  ;;  %v264_v6 = vld [vmem:[%s1739_s1 + $0xc0] sm:$0xff]  ;;  %v266_v7 = vld [vmem:[%s1739_s1 + $0xd0] sm:$0xff]  ;;  %v261_v8 = vld [vmem:[%s1739_s1 + $0xa8] sm:$0xff]  ;;  %s1368_s13 = scalar_lea.vmem %s1738_s0, %s1048_s22  ;;  %s1698_s27 = scalar_lea.vmem %s1743_s5, %s1048_s22 }
   0xe   : > { %349 = vmatprep.subr.mxu0 %v265_v4  ;;  %486 = vmatprep.subr.mxu1 %v267_v5  ;;  %v263_v9 = vld [vmem:[%s1739_s1 + $0xb8] sm:$0xff]  ;;  %v260_v10 = vld [vmem:[%s1739_s1 + $0xa0] sm:$0xff]  ;;  %v262_v11 = vld [vmem:[%s1739_s1 + $0xb0] sm:$0xff] }
   0xf   : > { %350 = vmatpush1.msra.mxu0 %v264_v6  ;;  %487 = vmatpush1.msra.mxu1 %v266_v7  ;;  %v257_v12 = vld [vmem:[%s1739_s1 + $0x88] sm:$0xff]  ;;  %v259_v13 = vld [vmem:[%s1739_s1 + $0x98] sm:$0xff]  ;;  %v256_v14 = vld [vmem:[%s1739_s1 + $0x80] sm:$0xff] }
  0x10   : > { %351 = vmatprep.subr.mxu0 %v261_v8  ;;  %488 = vmatprep.subr.mxu1 %v263_v9  ;;  %v258_v15 = vld [vmem:[%s1739_s1 + $0x90] sm:$0xff]  ;;  %v253_v16 = vld [vmem:[%s1739_s1 + $0x68] sm:$0xff]  ;;  %v255_v17 = vld [vmem:[%s1739_s1 + $0x78] sm:$0xff] }
  0x11   : > { %352 = vmatpush1.msra.mxu0 %v260_v10  ;;  %489 = vmatpush1.msra.mxu1 %v262_v11  ;;  %v252_v18 = vld [vmem:[%s1739_s1 + $0x60] sm:$0xff]  ;;  %v254_v19 = vld [vmem:[%s1739_s1 + $0x70] sm:$0xff]  ;;  %v249_v20 = vld [vmem:[%s1739_s1 + $0x48] sm:$0xff] }
  0x12   : > { %353 = vmatprep.subr.mxu0 %v257_v12  ;;  %490 = vmatprep.subr.mxu1 %v259_v13  ;;  %v251_v21 = vld [vmem:[%s1739_s1 + $0x58] sm:$0xff]  ;;  %v248_v22 = vld [vmem:[%s1739_s1 + $0x40] sm:$0xff]  ;;  %v250_v23 = vld [vmem:[%s1739_s1 + $0x50] sm:$0xff] }
  0x13   : > { %354 = vmatpush1.msra.mxu0 %v256_v14  ;;  %491 = vmatpush1.msra.mxu1 %v258_v15  ;;  %v245_v24 = vld [vmem:[%s1739_s1 + $0x28] sm:$0xff]  ;;  %v247_v25 = vld [vmem:[%s1739_s1 + $0x38] sm:$0xff]  ;;  %v244_v26 = vld [vmem:[%s1739_s1 + $0x20] sm:$0xff] }
  0x14   : > { %355 = vmatprep.subr.mxu0 %v253_v16  ;;  %492 = vmatprep.subr.mxu1 %v255_v17  ;;  %v246_v27 = vld [vmem:[%s1739_s1 + $0x30] sm:$0xff]  ;;  %v241_v28 = vld [vmem:[%s1739_s1 + $0x8] sm:$0xff]  ;;  %v243_v29 = vld [vmem:[%s1739_s1 + $0x18] sm:$0xff] }
  0x15   : > { %356 = vmatpush1.msra.mxu0 %v252_v18  ;;  %493 = vmatpush1.msra.mxu1 %v254_v19  ;;  %v240_v30 = vld [vmem:[%s1739_s1] sm:$0xff]  ;;  %v242_v31 = vld [vmem:[%s1739_s1 + $0x10] sm:$0xff]  ;;  %v684_v34 = vld [vmem:[%s1741_s3 + $0xf8] sm:$0xff] }
  0x16   : > { %357 = vmatprep.subr.mxu0 %v249_v20  ;;  %494 = vmatprep.subr.mxu1 %v251_v21  ;;  %v228_v32 = vld [vmem:[%s1368_s13] sm:$0xff]  ;;  %v716_v35 = vld [vmem:[%s1741_s3 + $0x1f8] sm:$0xff]  ;;  %v229_v38 = vld [vmem:[%s1368_s13 + $0x8] sm:$0xff] }
  0x17   : > { %358 = vmatpush1.msra.mxu0 %v248_v22  ;;  %495 = vmatpush1.msra.mxu1 %v250_v23  ;;  %v668_v36 = vld [vmem:[%s1741_s3 + $0x78] sm:$0xff]  ;;  %v683_v39 = vld [vmem:[%s1741_s3 + $0xf0] sm:$0xff]  ;;  %v682_v44 = vld [vmem:[%s1741_s3 + $0xe8] sm:$0xff] }
  0x18   : > { %359 = vmatprep.subr.mxu0 %v245_v24  ;;  %496 = vmatprep.subr.mxu1 %v247_v25  ;;  %v700_v37 = vld [vmem:[%s1741_s3 + $0x178] sm:$0xff]  ;;  %v715_v40 = vld [vmem:[%s1741_s3 + $0x1f0] sm:$0xff]  ;;  %v714_v45 = vld [vmem:[%s1741_s3 + $0x1e8] sm:$0xff] }
  0x19   : > { %360 = vmatpush1.msra.mxu0 %v244_v26  ;;  %497 = vmatpush1.msra.mxu1 %v246_v27  ;;  %v667_v41 = vld [vmem:[%s1741_s3 + $0x70] sm:$0xff]  ;;  %v666_v46 = vld [vmem:[%s1741_s3 + $0x68] sm:$0xff]  ;;  %v231_v48 = vld [vmem:[%s1368_s13 + $0x18] sm:$0xff] }
  0x1a   : > { %361 = vmatprep.subr.mxu0 %v241_v28  ;;  %498 = vmatprep.subr.mxu1 %v243_v29  ;;  %v699_v42 = vld [vmem:[%s1741_s3 + $0x170] sm:$0xff]  ;;  %v698_v47 = vld [vmem:[%s1741_s3 + $0x168] sm:$0xff]  ;;  %v681_v49 = vld [vmem:[%s1741_s3 + $0xe0] sm:$0xff] }
  0x1b   : > { %362 = vmatpush1.msra.mxu0 %v240_v30  ;;  %395 = vmatprep.mubr.f32.mxu0 %v1230_v33  ;;  %v230_v43 = vld [vmem:[%s1368_s13 + $0x10] sm:$0xff]  ;;  %v713_v50 = vld [vmem:[%s1741_s3 + $0x1e0] sm:$0xff]  ;;  %v680_v54 = vld [vmem:[%s1741_s3 + $0xd8] sm:$0xff] }
  0x1c   : > { %499 = vmatpush1.msra.mxu1 %v242_v31  ;;  %532 = vmatprep.mubr.f32.mxu1 %v1230_v33  ;;  %v665_v51 = vld [vmem:[%s1741_s3 + $0x60] sm:$0xff]  ;;  %v712_v55 = vld [vmem:[%s1741_s3 + $0x1d8] sm:$0xff]  ;;  %v233_v58 = vld [vmem:[%s1368_s13 + $0x28] sm:$0xff] }
  0x1d   : > { %1050 = vmatmul.mubr.msk.f32.vlgmr.msra.gmra.mxu0 %vm294_vm0, %v228_v32  ;;  %1062 = vmatmul.mubr.msk.f32.vlgmr.msra.gmra.mxu1 %vm294_vm0, %v228_v32  ;;  %v697_v52 = vld [vmem:[%s1741_s3 + $0x160] sm:$0xff]  ;;  %v664_v56 = vld [vmem:[%s1741_s3 + $0x58] sm:$0xff]  ;;  %v679_v59 = vld [vmem:[%s1741_s3 + $0xd0] sm:$0xff] }
  0x1e   : > { %401 = vmatprep.mubr.f32.mxu0 %v1230_v33  ;;  %538 = vmatprep.mubr.f32.mxu1 %v1230_v33  ;;  %v232_v53 = vld [vmem:[%s1368_s13 + $0x20] sm:$0xff]  ;;  %v696_v57 = vld [vmem:[%s1741_s3 + $0x158] sm:$0xff]  ;;  %v711_v60 = vld [vmem:[%s1741_s3 + $0x1d0] sm:$0xff] }
  0x1f   : > { %1077 = vmatprep.subr.mxu0 %v684_v34  ;;  %1145 = vmatprep.subr.mxu1 %v716_v35  ;;  %v663_v61 = vld [vmem:[%s1741_s3 + $0x50] sm:$0xff]  ;;  %v678_v0 = vld [vmem:[%s1741_s3 + $0xc8] sm:$0xff]  ;;  %v235_v4 = vld [vmem:[%s1368_s13 + $0x38] sm:$0xff] }
  0x20   : > { %1078 = vmatpush3.msra.mxu0 %v668_v36  ;;  %1146 = vmatpush3.msra.mxu1 %v700_v37  ;;  %v695_v62 = vld [vmem:[%s1741_s3 + $0x150] sm:$0xff]  ;;  %v710_v1 = vld [vmem:[%s1741_s3 + $0x1c8] sm:$0xff]  ;;  %v677_v5 = vld [vmem:[%s1741_s3 + $0xc0] sm:$0xff] }
  0x21   : > { %1051 = vmatmul.mubr.msk.f32.gmra.mxu0 %vm294_vm0, %v229_v38  ;;  %1063 = vmatmul.mubr.msk.f32.gmra.mxu1 %vm294_vm0, %v229_v38  ;;  %v234_v63 = vld [vmem:[%s1368_s13 + $0x30] sm:$0xff]  ;;  %v662_v2 = vld [vmem:[%s1741_s3 + $0x48] sm:$0xff]  ;;  %v709_v6 = vld [vmem:[%s1741_s3 + $0x1c0] sm:$0xff] }
  0x22   : > { %407 = vmatprep.mubr.f32.mxu0 %v1230_v33  ;;  %544 = vmatprep.mubr.f32.mxu1 %v1230_v33  ;;  %v694_v3 = vld [vmem:[%s1741_s3 + $0x148] sm:$0xff]  ;;  %v661_v7 = vld [vmem:[%s1741_s3 + $0x40] sm:$0xff]  ;;  %v676_v10 = vld [vmem:[%s1741_s3 + $0xb8] sm:$0xff] }
  0x23   : > { %1079 = vmatprep.subr.mxu0 %v683_v39  ;;  %1147 = vmatprep.subr.mxu1 %v715_v40  ;;  %v693_v8 = vld [vmem:[%s1741_s3 + $0x140] sm:$0xff]  ;;  %v708_v11 = vld [vmem:[%s1741_s3 + $0x1b8] sm:$0xff]  ;;  %v237_v14 = vld [vmem:[%s1368_s13 + $0x48] sm:$0xff] }
  0x24   : > { %1080 = vmatpush3.msra.mxu0 %v667_v41  ;;  %1148 = vmatpush3.msra.mxu1 %v699_v42  ;;  %v236_v9 = vld [vmem:[%s1368_s13 + $0x40] sm:$0xff]  ;;  %v660_v12 = vld [vmem:[%s1741_s3 + $0x38] sm:$0xff]  ;;  %v675_v15 = vld [vmem:[%s1741_s3 + $0xb0] sm:$0xff] }
  0x25   : > { %1052 = vmatmul.mubr.msk.f32.gmra.mxu0 %vm294_vm0, %v230_v43  ;;  %1064 = vmatmul.mubr.msk.f32.gmra.mxu1 %vm294_vm0, %v230_v43  ;;  %v692_v13 = vld [vmem:[%s1741_s3 + $0x138] sm:$0xff]  ;;  %v707_v16 = vld [vmem:[%s1741_s3 + $0x1b0] sm:$0xff]  ;;  %v674_v20 = vld [vmem:[%s1741_s3 + $0xa8] sm:$0xff] }
  0x26   : > { %413 = vmatprep.mubr.f32.mxu0 %v1230_v33  ;;  %550 = vmatprep.mubr.f32.mxu1 %v1230_v33  ;;  %v659_v17 = vld [vmem:[%s1741_s3 + $0x30] sm:$0xff]  ;;  %v706_v21 = vld [vmem:[%s1741_s3 + $0x1a8] sm:$0xff]  ;;  %v239_v24 = vld [vmem:[%s1368_s13 + $0x58] sm:$0xff] }
  0x27   : > { %1081 = vmatprep.subr.mxu0 %v682_v44  ;;  %1149 = vmatprep.subr.mxu1 %v714_v45  ;;  %v691_v18 = vld [vmem:[%s1741_s3 + $0x130] sm:$0xff]  ;;  %v658_v22 = vld [vmem:[%s1741_s3 + $0x28] sm:$0xff]  ;;  %v673_v25 = vld [vmem:[%s1741_s3 + $0xa0] sm:$0xff]  ;;  %v274_v45 = vlaneseq }
  0x28   : > { %1082 = vmatpush3.msra.mxu0 %v666_v46  ;;  %1150 = vmatpush3.msra.mxu1 %v698_v47  ;;  %v238_v19 = vld [vmem:[%s1368_s13 + $0x50] sm:$0xff]  ;;  %v690_v23 = vld [vmem:[%s1741_s3 + $0x128] sm:$0xff]  ;;  %v705_v26 = vld [vmem:[%s1741_s3 + $0x1a0] sm:$0xff] }
  0x29   : > { %1053 = vmatmul.mubr.msk.f32.gmra.mxu0 %vm294_vm0, %v231_v48  ;;  %1065 = vmatmul.mubr.msk.f32.gmra.mxu1 %vm294_vm0, %v231_v48  ;;  %v657_v27 = vld [vmem:[%s1741_s3 + $0x20] sm:$0xff]  ;;  %v672_v29 = vld [vmem:[%s1741_s3 + $0x98] sm:$0xff]  ;;  %v655_v34 = vld [vmem:[%s1741_s3 + $0x10] sm:$0xff]  ;;  %v275_v46 = vshrl.u32 %v274_v45, 7 }
  0x2a   : > { %419 = vmatprep.mubr.f32.mxu0 %v1230_v33  ;;  %556 = vmatprep.mubr.f32.mxu1 %v1230_v33  ;;  %v689_v28 = vld [vmem:[%s1741_s3 + $0x120] sm:$0xff]  ;;  %v704_v30 = vld [vmem:[%s1741_s3 + $0x198] sm:$0xff]  ;;  %v703_v35 = vld [vmem:[%s1741_s3 + $0x190] sm:$0xff] }
  0x2b   : > { %1083 = vmatprep.subr.mxu0 %v681_v49  ;;  %1151 = vmatprep.subr.mxu1 %v713_v50  ;;  %v656_v31 = vld [vmem:[%s1741_s3 + $0x18] sm:$0xff]  ;;  %v687_v36 = vld [vmem:[%s1741_s3 + $0x110] sm:$0xff]  ;;  %v670_v37 = vld [vmem:[%s1741_s3 + $0x88] sm:$0xff]  ;;  %v284_v47 = vsub.s32 2, %v275_v46  ;;  %v276_v48 = vsub.s32 0, %v275_v46  ;;  %v280_v50 = vsub.s32 1, %v275_v46 }
  0x2c   : > { %1084 = vmatpush3.msra.mxu0 %v665_v51  ;;  %1152 = vmatpush3.msra.mxu1 %v697_v52  ;;  %v688_v32 = vld [vmem:[%s1741_s3 + $0x118] sm:$0xff]  ;;  %v702_v38 = vld [vmem:[%s1741_s3 + $0x188] sm:$0xff]  ;;  %v669_v41 = vld [vmem:[%s1741_s3 + $0x80] sm:$0xff]  ;;  %v288_v51 = vsub.s32 3, %v275_v46 }
  0x2d   : > { %1054 = vmatmul.mubr.msk.f32.gmra.mxu0 %vm294_vm0, %v232_v53  ;;  %1066 = vmatmul.mubr.msk.f32.gmra.mxu1 %vm294_vm0, %v232_v53  ;;  %v654_v39 = vld [vmem:[%s1741_s3 + $0x8] sm:$0xff]  ;;  %v701_v42 = vld [vmem:[%s1741_s3 + $0x180] sm:$0xff] }
  0x2e   : > { %425 = vmatprep.mubr.f32.mxu0 %v1230_v33  ;;  %562 = vmatprep.mubr.f32.mxu1 %v1230_v33  ;;  %v686_v40 = vld [vmem:[%s1741_s3 + $0x108] sm:$0xff]  ;;  %v653_v43 = vld [vmem:[%s1741_s3] sm:$0xff] }
  0x2f   : > { %1085 = vmatprep.subr.mxu0 %v680_v54  ;;  %1153 = vmatprep.subr.mxu1 %v712_v55  ;;  %v685_v44 = vld [vmem:[%s1741_s3 + $0x100] sm:$0xff] }
  0x30   : > { %1086 = vmatpush3.msra.mxu0 %v664_v56  ;;  %1154 = vmatpush3.msra.mxu1 %v696_v57  ;;  %v272_v49 = vld [vmem:[%s1740_s2] sm:$0xf] }
  0x31   : > { %1055 = vmatmul.mubr.msk.f32.gmra.mxu0 %vm294_vm0, %v233_v58  ;;  %1067 = vmatmul.mubr.msk.f32.gmra.mxu1 %vm294_vm0, %v233_v58  ;;  %v1631_v52 = vrot.slane %v272_v49, %v284_v47  ;;  %v1633_v53 = vrot.slane %v272_v49, %v276_v48  ;;  %v1635_v54 = vrot.slane %v272_v49, %v280_v50 }
  0x32   : > { %431 = vmatprep.mubr.f32.mxu0 %v1230_v33  ;;  %568 = vmatprep.mubr.f32.mxu1 %v1230_v33  ;;  %v1637_v55 = vrot.slane %v272_v49, %v288_v51 }
  0x33   : > { %1087 = vmatprep.subr.mxu0 %v679_v59  ;;  %1155 = vmatprep.subr.mxu1 %v711_v60 }
  0x34   : > { %1088 = vmatpush3.msra.mxu0 %v663_v61  ;;  %1156 = vmatpush3.msra.mxu1 %v695_v62 }
  0x35   : > { %1056 = vmatmul.mubr.msk.f32.gmra.mxu0 %vm294_vm0, %v234_v63  ;;  %1068 = vmatmul.mubr.msk.f32.gmra.mxu1 %vm294_vm0, %v234_v63 }
  0x36   : > { %437 = vmatprep.mubr.f32.mxu0 %v1230_v33  ;;  %574 = vmatprep.mubr.f32.mxu1 %v1230_v33 }
  0x37   : > { %1089 = vmatprep.subr.mxu0 %v678_v0  ;;  %1157 = vmatprep.subr.mxu1 %v710_v1 }
  0x38   : > { %1090 = vmatpush3.msra.mxu0 %v662_v2  ;;  %1158 = vmatpush3.msra.mxu1 %v694_v3 }
  0x39   : > { %1057 = vmatmul.mubr.msk.f32.gmra.mxu0 %vm294_vm0, %v235_v4  ;;  %1069 = vmatmul.mubr.msk.f32.gmra.mxu1 %vm294_vm0, %v235_v4 }
  0x3a   : > { %443 = vmatprep.mubr.f32.mxu0 %v1230_v33  ;;  %580 = vmatprep.mubr.f32.mxu1 %v1230_v33 }
  0x3b   : > { %1091 = vmatprep.subr.mxu0 %v677_v5  ;;  %1159 = vmatprep.subr.mxu1 %v709_v6 }
  0x3c   : > { %1092 = vmatpush3.msra.mxu0 %v661_v7  ;;  %1160 = vmatpush3.msra.mxu1 %v693_v8 }
  0x3d   : > { %1058 = vmatmul.mubr.msk.f32.gmra.mxu0 %vm294_vm0, %v236_v9  ;;  %1070 = vmatmul.mubr.msk.f32.gmra.mxu1 %vm294_vm0, %v236_v9 }
  0x3e   : > { %449 = vmatprep.mubr.f32.mxu0 %v1230_v33  ;;  %586 = vmatprep.mubr.f32.mxu1 %v1230_v33 }
  0x3f   : > { %1093 = vmatprep.subr.mxu0 %v676_v10  ;;  %1161 = vmatprep.subr.mxu1 %v708_v11 }
  0x40   : > { %1094 = vmatpush3.msra.mxu0 %v660_v12  ;;  %1162 = vmatpush3.msra.mxu1 %v692_v13 }
  0x41   : > { %1059 = vmatmul.mubr.msk.f32.gmra.mxu0 %vm294_vm0, %v237_v14  ;;  %1071 = vmatmul.mubr.msk.f32.gmra.mxu1 %vm294_vm0, %v237_v14 }
  0x42   : > { %455 = vmatprep.mubr.f32.mxu0 %v1230_v33  ;;  %592 = vmatprep.mubr.f32.mxu1 %v1230_v33 }
  0x43   : > { %1095 = vmatprep.subr.mxu0 %v675_v15  ;;  %1163 = vmatprep.subr.mxu1 %v707_v16 }
  0x44   : > { %1096 = vmatpush3.msra.mxu0 %v659_v17  ;;  %1164 = vmatpush3.msra.mxu1 %v691_v18 }
  0x45   : > { %1060 = vmatmul.mubr.msk.f32.gmra.mxu0 %vm294_vm0, %v238_v19  ;;  %1072 = vmatmul.mubr.msk.f32.gmra.mxu1 %vm294_vm0, %v238_v19 }
  0x46   : > { %461 = vmatprep.mubr.f32.mxu0 %v1230_v33  ;;  %598 = vmatprep.mubr.f32.mxu1 %v1230_v33  ;;  %v671_v33 = vld [vmem:[%s1741_s3 + $0x90] sm:$0xff] }
  0x47   : > { %1097 = vmatprep.subr.mxu0 %v674_v20  ;;  %1165 = vmatprep.subr.mxu1 %v706_v21 }
  0x48   : > { %1098 = vmatpush3.msra.mxu0 %v658_v22  ;;  %1166 = vmatpush3.msra.mxu1 %v690_v23 }
  0x49   : > { %1061 = vmatmul.mubr.msk.f32.gmra.mxu0 %vm294_vm0, %v239_v24  ;;  %1073 = vmatmul.mubr.msk.f32.gmra.mxu1 %vm294_vm0, %v239_v24 }
  0x4a   : > { %1099 = vmatprep.subr.mxu0 %v673_v25  ;;  %1167 = vmatprep.subr.mxu1 %v705_v26 }
  0x4b   : > { %1100 = vmatpush3.msra.mxu0 %v657_v27  ;;  %1168 = vmatpush3.msra.mxu1 %v689_v28 }
  0x4c   : > { %1101 = vmatprep.subr.mxu0 %v672_v29  ;;  %1169 = vmatprep.subr.mxu1 %v704_v30 }
  0x4d   : > { %1102 = vmatpush3.msra.mxu0 %v656_v31  ;;  %1170 = vmatpush3.msra.mxu1 %v688_v32 }
  0x4e   : > { %1103 = vmatprep.subr.mxu0 %v671_v33  ;;  %1171 = vmatprep.subr.mxu1 %v703_v35 }
  0x4f   : > { %1104 = vmatpush3.msra.mxu0 %v655_v34  ;;  %1172 = vmatpush3.msra.mxu1 %v687_v36 }
  0x50   : > { %1105 = vmatprep.subr.mxu0 %v670_v37  ;;  %1173 = vmatprep.subr.mxu1 %v702_v38 }
  0x51   : > { %1106 = vmatpush3.msra.mxu0 %v654_v39  ;;  %1174 = vmatpush3.msra.mxu1 %v686_v40 }
  0x52   : > { %1107 = vmatprep.subr.mxu0 %v669_v41  ;;  %1175 = vmatprep.subr.mxu1 %v701_v42 }
  0x53   : > { %1108 = vmatpush3.msra.mxu0 %v653_v43  ;;  %1176 = vmatpush3.msra.mxu1 %v685_v44 }
  0xdd   : > { %v397_v56 = vpop.f32.mrf.mxu0  ;;  %v534_v57 = vpop.f32.mrf.mxu1 }
  0xde   : > { %v535_v58 = vadd.f32 %v534_v57, %v1631_v52  ;;  %v398_v59 = vadd.f32 %v397_v56, %v1633_v53 }
  0xdf   : > { %v399_v60 = vpop.f32.mrf.mxu0  ;;  %v536_v61 = vpop.f32.mrf.mxu1 }
  0xe0   : > { %v400_v62 = vadd.f32 %v399_v60, %v1635_v54  ;;  %v537_v63 = vadd.f32 %v536_v61, %v1637_v55  ;;  %v607_v0 = vmax.f32 %v535_v58, 0.0  ;;  %v605_v6 = vmax.f32 %v398_v59, 0.0 }
  0xe1   : > { %v403_v1 = vpop.f32.mrf.mxu0  ;;  %v540_v2 = vpop.f32.mrf.mxu1 }
  0xe2   : > { %v606_v3 = vmax.f32 %v400_v62, 0.0  ;;  %v608_v4 = vmax.f32 %v537_v63, 0.0  ;;  %v541_v5 = vadd.f32 %v540_v2, %v1631_v52  ;;  %v404_v7 = vadd.f32 %v403_v1, %v1633_v53 }
  0xe3   : > { %v405_v8 = vpop.f32.mrf.mxu0  ;;  %v542_v9 = vpop.f32.mrf.mxu1 }
  0xe4   : > { %v406_v10 = vadd.f32 %v405_v8, %v1635_v54  ;;  %v543_v11 = vadd.f32 %v542_v9, %v1637_v55  ;;  %788 = vmatprep.mubr.f32.mxu0 %v606_v3  ;;  %913 = vmatprep.mubr.f32.mxu1 %v608_v4  ;;  %v611_v12 = vmax.f32 %v541_v5, 0.0  ;;  %v609_v18 = vmax.f32 %v404_v7, 0.0 }
  0xe5   : > { %v409_v13 = vpop.f32.mrf.mxu0  ;;  %v546_v14 = vpop.f32.mrf.mxu1  ;;  %789 = vmatmul.mubr.f32.vlgmr.msra.gmra.mxu0 %v605_v6  ;;  %914 = vmatmul.mubr.f32.vlgmr.msra.gmra.mxu1 %v607_v0 }
  0xe6   : > { %v610_v15 = vmax.f32 %v406_v10, 0.0  ;;  %v612_v16 = vmax.f32 %v543_v11, 0.0  ;;  %v547_v17 = vadd.f32 %v546_v14, %v1631_v52  ;;  %v410_v19 = vadd.f32 %v409_v13, %v1633_v53 }
  0xe7   : > { %v411_v20 = vpop.f32.mrf.mxu0  ;;  %v548_v21 = vpop.f32.mrf.mxu1 }
  0xe8   : > { %v412_v22 = vadd.f32 %v411_v20, %v1635_v54  ;;  %v549_v23 = vadd.f32 %v548_v21, %v1637_v55  ;;  %793 = vmatprep.mubr.f32.mxu0 %v610_v15  ;;  %918 = vmatprep.mubr.f32.mxu1 %v612_v16  ;;  %v615_v24 = vmax.f32 %v547_v17, 0.0  ;;  %v613_v30 = vmax.f32 %v410_v19, 0.0 }
  0xe9   : > { %v415_v25 = vpop.f32.mrf.mxu0  ;;  %v552_v26 = vpop.f32.mrf.mxu1  ;;  %794 = vmatmul.mubr.f32.gmra.mxu0 %v609_v18  ;;  %919 = vmatmul.mubr.f32.gmra.mxu1 %v611_v12 }
  0xea   : > { %v614_v27 = vmax.f32 %v412_v22, 0.0  ;;  %v616_v28 = vmax.f32 %v549_v23, 0.0  ;;  %v553_v29 = vadd.f32 %v552_v26, %v1631_v52  ;;  %v416_v31 = vadd.f32 %v415_v25, %v1633_v53 }
  0xeb   : > { %v417_v32 = vpop.f32.mrf.mxu0  ;;  %v554_v33 = vpop.f32.mrf.mxu1 }
  0xec   : > { %v418_v34 = vadd.f32 %v417_v32, %v1635_v54  ;;  %v555_v35 = vadd.f32 %v554_v33, %v1637_v55  ;;  %798 = vmatprep.mubr.f32.mxu0 %v614_v27  ;;  %923 = vmatprep.mubr.f32.mxu1 %v616_v28  ;;  %v619_v36 = vmax.f32 %v553_v29, 0.0  ;;  %v617_v42 = vmax.f32 %v416_v31, 0.0 }
  0xed   : > { %v421_v37 = vpop.f32.mrf.mxu0  ;;  %v558_v38 = vpop.f32.mrf.mxu1  ;;  %799 = vmatmul.mubr.f32.gmra.mxu0 %v613_v30  ;;  %924 = vmatmul.mubr.f32.gmra.mxu1 %v615_v24 }
  0xee   : > { %v618_v39 = vmax.f32 %v418_v34, 0.0  ;;  %v620_v40 = vmax.f32 %v555_v35, 0.0  ;;  %v559_v41 = vadd.f32 %v558_v38, %v1631_v52  ;;  %v422_v43 = vadd.f32 %v421_v37, %v1633_v53 }
  0xef   : > { %v423_v44 = vpop.f32.mrf.mxu0  ;;  %v560_v45 = vpop.f32.mrf.mxu1 }
  0xf0   : > { %v424_v46 = vadd.f32 %v423_v44, %v1635_v54  ;;  %v561_v47 = vadd.f32 %v560_v45, %v1637_v55  ;;  %803 = vmatprep.mubr.f32.mxu0 %v618_v39  ;;  %928 = vmatprep.mubr.f32.mxu1 %v620_v40  ;;  %v623_v48 = vmax.f32 %v559_v41, 0.0  ;;  %v621_v58 = vmax.f32 %v422_v43, 0.0 }
  0xf1   : > { %v427_v49 = vpop.f32.mrf.mxu0  ;;  %v564_v50 = vpop.f32.mrf.mxu1  ;;  %804 = vmatmul.mubr.f32.gmra.mxu0 %v617_v42  ;;  %929 = vmatmul.mubr.f32.gmra.mxu1 %v619_v36 }
  0xf2   : > { %v622_v51 = vmax.f32 %v424_v46, 0.0  ;;  %v624_v56 = vmax.f32 %v561_v47, 0.0  ;;  %v565_v57 = vadd.f32 %v564_v50, %v1631_v52  ;;  %v428_v59 = vadd.f32 %v427_v49, %v1633_v53 }
  0xf3   : > { %v429_v60 = vpop.f32.mrf.mxu0  ;;  %v566_v61 = vpop.f32.mrf.mxu1 }
  0xf4   : > { %v430_v62 = vadd.f32 %v429_v60, %v1635_v54  ;;  %v567_v63 = vadd.f32 %v566_v61, %v1637_v55  ;;  %808 = vmatprep.mubr.f32.mxu0 %v622_v51  ;;  %933 = vmatprep.mubr.f32.mxu1 %v624_v56  ;;  %v627_v0 = vmax.f32 %v565_v57, 0.0  ;;  %v625_v6 = vmax.f32 %v428_v59, 0.0 }
  0xf5   : > { %v433_v1 = vpop.f32.mrf.mxu0  ;;  %v570_v2 = vpop.f32.mrf.mxu1  ;;  %809 = vmatmul.mubr.f32.gmra.mxu0 %v621_v58  ;;  %934 = vmatmul.mubr.f32.gmra.mxu1 %v623_v48 }
  0xf6   : > { %v626_v3 = vmax.f32 %v430_v62, 0.0  ;;  %v628_v4 = vmax.f32 %v567_v63, 0.0  ;;  %v571_v5 = vadd.f32 %v570_v2, %v1631_v52  ;;  %v434_v7 = vadd.f32 %v433_v1, %v1633_v53 }
  0xf7   : > { %v435_v8 = vpop.f32.mrf.mxu0  ;;  %v572_v9 = vpop.f32.mrf.mxu1 }
  0xf8   : > { %v436_v10 = vadd.f32 %v435_v8, %v1635_v54  ;;  %v573_v11 = vadd.f32 %v572_v9, %v1637_v55  ;;  %813 = vmatprep.mubr.f32.mxu0 %v626_v3  ;;  %938 = vmatprep.mubr.f32.mxu1 %v628_v4  ;;  %v631_v12 = vmax.f32 %v571_v5, 0.0  ;;  %v629_v18 = vmax.f32 %v434_v7, 0.0 }
  0xf9   : > { %v439_v13 = vpop.f32.mrf.mxu0  ;;  %v576_v14 = vpop.f32.mrf.mxu1  ;;  %814 = vmatmul.mubr.f32.gmra.mxu0 %v625_v6  ;;  %939 = vmatmul.mubr.f32.gmra.mxu1 %v627_v0 }
  0xfa   : > { %v630_v15 = vmax.f32 %v436_v10, 0.0  ;;  %v632_v16 = vmax.f32 %v573_v11, 0.0  ;;  %v577_v17 = vadd.f32 %v576_v14, %v1631_v52  ;;  %v440_v19 = vadd.f32 %v439_v13, %v1633_v53 }
  0xfb   : > { %v441_v20 = vpop.f32.mrf.mxu0  ;;  %v578_v21 = vpop.f32.mrf.mxu1 }
  0xfc   : > { %v442_v22 = vadd.f32 %v441_v20, %v1635_v54  ;;  %v579_v23 = vadd.f32 %v578_v21, %v1637_v55  ;;  %818 = vmatprep.mubr.f32.mxu0 %v630_v15  ;;  %943 = vmatprep.mubr.f32.mxu1 %v632_v16  ;;  %v635_v24 = vmax.f32 %v577_v17, 0.0  ;;  %v633_v30 = vmax.f32 %v440_v19, 0.0 }
  0xfd   : > { %v445_v25 = vpop.f32.mrf.mxu0  ;;  %v582_v26 = vpop.f32.mrf.mxu1  ;;  %819 = vmatmul.mubr.f32.gmra.mxu0 %v629_v18  ;;  %944 = vmatmul.mubr.f32.gmra.mxu1 %v631_v12 }
  0xfe   : > { %v634_v27 = vmax.f32 %v442_v22, 0.0  ;;  %v636_v28 = vmax.f32 %v579_v23, 0.0  ;;  %v583_v29 = vadd.f32 %v582_v26, %v1631_v52  ;;  %v446_v31 = vadd.f32 %v445_v25, %v1633_v53 }
  0xff   : > { %v447_v32 = vpop.f32.mrf.mxu0  ;;  %v584_v33 = vpop.f32.mrf.mxu1 }
 0x100   : > { %v448_v34 = vadd.f32 %v447_v32, %v1635_v54  ;;  %v585_v35 = vadd.f32 %v584_v33, %v1637_v55  ;;  %823 = vmatprep.mubr.f32.mxu0 %v634_v27  ;;  %948 = vmatprep.mubr.f32.mxu1 %v636_v28  ;;  %v639_v36 = vmax.f32 %v583_v29, 0.0  ;;  %v637_v42 = vmax.f32 %v446_v31, 0.0 }
 0x101   : > { %v451_v37 = vpop.f32.mrf.mxu0  ;;  %v588_v38 = vpop.f32.mrf.mxu1  ;;  %824 = vmatmul.mubr.f32.gmra.mxu0 %v633_v30  ;;  %949 = vmatmul.mubr.f32.gmra.mxu1 %v635_v24 }
 0x102   : > { %v638_v39 = vmax.f32 %v448_v34, 0.0  ;;  %v640_v40 = vmax.f32 %v585_v35, 0.0  ;;  %v589_v41 = vadd.f32 %v588_v38, %v1631_v52  ;;  %v452_v43 = vadd.f32 %v451_v37, %v1633_v53 }
 0x103   : > { %v453_v44 = vpop.f32.mrf.mxu0  ;;  %v590_v45 = vpop.f32.mrf.mxu1 }
 0x104   : > { %v454_v46 = vadd.f32 %v453_v44, %v1635_v54  ;;  %v591_v47 = vadd.f32 %v590_v45, %v1637_v55  ;;  %828 = vmatprep.mubr.f32.mxu0 %v638_v39  ;;  %953 = vmatprep.mubr.f32.mxu1 %v640_v40  ;;  %v643_v48 = vmax.f32 %v589_v41, 0.0  ;;  %v641_v58 = vmax.f32 %v452_v43, 0.0 }
 0x105   : > { %v457_v49 = vpop.f32.mrf.mxu0  ;;  %v594_v50 = vpop.f32.mrf.mxu1  ;;  %829 = vmatmul.mubr.f32.gmra.mxu0 %v637_v42  ;;  %954 = vmatmul.mubr.f32.gmra.mxu1 %v639_v36 }
 0x106   : > { %v642_v51 = vmax.f32 %v454_v46, 0.0  ;;  %v644_v56 = vmax.f32 %v591_v47, 0.0  ;;  %v595_v57 = vadd.f32 %v594_v50, %v1631_v52  ;;  %v458_v59 = vadd.f32 %v457_v49, %v1633_v53 }
 0x107   : > { %v459_v60 = vpop.f32.mrf.mxu0  ;;  %v596_v61 = vpop.f32.mrf.mxu1 }
 0x108   : > { %v460_v62 = vadd.f32 %v459_v60, %v1635_v54  ;;  %v597_v63 = vadd.f32 %v596_v61, %v1637_v55  ;;  %833 = vmatprep.mubr.f32.mxu0 %v642_v51  ;;  %958 = vmatprep.mubr.f32.mxu1 %v644_v56  ;;  %v647_v0 = vmax.f32 %v595_v57, 0.0  ;;  %v645_v6 = vmax.f32 %v458_v59, 0.0 }
 0x109   : > { %v463_v1 = vpop.f32.mrf.mxu0  ;;  %v600_v2 = vpop.f32.mrf.mxu1  ;;  %834 = vmatmul.mubr.f32.gmra.mxu0 %v641_v58  ;;  %959 = vmatmul.mubr.f32.gmra.mxu1 %v643_v48 }
 0x10a   : > { %v646_v3 = vmax.f32 %v460_v62, 0.0  ;;  %v648_v4 = vmax.f32 %v597_v63, 0.0  ;;  %v601_v5 = vadd.f32 %v600_v2, %v1631_v52  ;;  %v464_v7 = vadd.f32 %v463_v1, %v1633_v53 }
 0x10b   : > { %v465_v8 = vpop.f32.mrf.mxu0  ;;  %v602_v9 = vpop.f32.mrf.mxu1 }
 0x10c   : > { %v466_v10 = vadd.f32 %v465_v8, %v1635_v54  ;;  %v603_v11 = vadd.f32 %v602_v9, %v1637_v55  ;;  %838 = vmatprep.mubr.f32.mxu0 %v646_v3  ;;  %963 = vmatprep.mubr.f32.mxu1 %v648_v4  ;;  %v651_v12 = vmax.f32 %v601_v5, 0.0  ;;  %v649_v15 = vmax.f32 %v464_v7, 0.0  ;;  %v1690_v54 = vld [vmem:[%s1742_s4] ss:$0 sm:$0xff] }
 0x10d   : > { %839 = vmatmul.mubr.f32.gmra.mxu0 %v645_v6  ;;  %964 = vmatmul.mubr.f32.gmra.mxu1 %v647_v0 }
 0x10e   : > { %v650_v13 = vmax.f32 %v466_v10, 0.0  ;;  %v652_v14 = vmax.f32 %v603_v11, 0.0 }
 0x110   : > { %843 = vmatprep.mubr.f32.mxu0 %v650_v13  ;;  %968 = vmatprep.mubr.f32.mxu1 %v652_v14 }
 0x111   : > { %844 = vmatmul.mubr.f32.gmra.mxu0 %v649_v15  ;;  %969 = vmatmul.mubr.f32.gmra.mxu1 %v651_v12 }
 0x1a5   : > { %v1109_v52 = vpop.f32.mrf.mxu0  ;;  %v1177_v53 = vpop.f32.mrf.mxu1 }
 0x1a7   : > { %v1110_v55 = vpop.f32.mrf.mxu0  ;;  %v1178_v16 = vpop.f32.mrf.mxu1 }
 0x1a8   : > { %v1111_v17 = vadd.f32 %v1110_v55, %v1109_v52  ;;  %v1179_v21 = vadd.f32 %v1178_v16, %v1177_v53 }
 0x1a9   : > { %v1112_v18 = vpop.f32.mrf.mxu0  ;;  %v1180_v19 = vpop.f32.mrf.mxu1 }
 0x1aa   : > { %v791_v20 = vadd.f32 %v1111_v17, %v1690_v54 }
 0x1ab   : > { %v1113_v22 = vpop.f32.mrf.mxu0  ;;  %v1181_v23 = vpop.f32.mrf.mxu1 }
 0x1ac   : > { %v916_v24 = vadd.f32 %v1179_v21, %v791_v20  ;;  %v1114_v25 = vadd.f32 %v1113_v22, %v1112_v18  ;;  %v1182_v29 = vadd.f32 %v1181_v23, %v1180_v19 }
 0x1ad   : > { %v1115_v26 = vpop.f32.mrf.mxu0  ;;  %v1183_v27 = vpop.f32.mrf.mxu1 }
 0x1ae   : > { %975 = vst.msk [vmem:[%s1698_s27] sm:$0xff] %vm974_vm1, %v916_v24  ;;  %v796_v28 = vadd.f32 %v1114_v25, %v1690_v54 }
 0x1af   : > { %v1116_v30 = vpop.f32.mrf.mxu0  ;;  %v1184_v31 = vpop.f32.mrf.mxu1 }
 0x1b0   : > { %v921_v32 = vadd.f32 %v1182_v29, %v796_v28  ;;  %v1117_v33 = vadd.f32 %v1116_v30, %v1115_v26  ;;  %v1185_v37 = vadd.f32 %v1184_v31, %v1183_v27 }
 0x1b1   : > { %v1118_v34 = vpop.f32.mrf.mxu0  ;;  %v1186_v35 = vpop.f32.mrf.mxu1 }
 0x1b2   : > { %976 = vst.msk [vmem:[%s1698_s27 + $0x8] sm:$0xff] %vm974_vm1, %v921_v32  ;;  %v801_v36 = vadd.f32 %v1117_v33, %v1690_v54 }
 0x1b3   : > { %v1119_v38 = vpop.f32.mrf.mxu0  ;;  %v1187_v39 = vpop.f32.mrf.mxu1 }
 0x1b4   : > { %v926_v40 = vadd.f32 %v1185_v37, %v801_v36  ;;  %v1120_v41 = vadd.f32 %v1119_v38, %v1118_v34  ;;  %v1188_v45 = vadd.f32 %v1187_v39, %v1186_v35 }
 0x1b5   : > { %v1121_v42 = vpop.f32.mrf.mxu0  ;;  %v1189_v43 = vpop.f32.mrf.mxu1 }
 0x1b6   : > { %977 = vst.msk [vmem:[%s1698_s27 + $0x10] sm:$0xff] %vm974_vm1, %v926_v40  ;;  %v806_v44 = vadd.f32 %v1120_v41, %v1690_v54 }
 0x1b7   : > { %v1122_v46 = vpop.f32.mrf.mxu0  ;;  %v1190_v47 = vpop.f32.mrf.mxu1 }
 0x1b8   : > { %v931_v48 = vadd.f32 %v1188_v45, %v806_v44  ;;  %v1123_v49 = vadd.f32 %v1122_v46, %v1121_v42  ;;  %v1191_v57 = vadd.f32 %v1190_v47, %v1189_v43 }
 0x1b9   : > { %v1124_v50 = vpop.f32.mrf.mxu0  ;;  %v1192_v51 = vpop.f32.mrf.mxu1 }
 0x1ba   : > { %978 = vst.msk [vmem:[%s1698_s27 + $0x18] sm:$0xff] %vm974_vm1, %v931_v48  ;;  %v811_v56 = vadd.f32 %v1123_v49, %v1690_v54 }
 0x1bb   : > { %v1125_v58 = vpop.f32.mrf.mxu0  ;;  %v1193_v59 = vpop.f32.mrf.mxu1 }
 0x1bc   : > { %v936_v60 = vadd.f32 %v1191_v57, %v811_v56  ;;  %v1126_v61 = vadd.f32 %v1125_v58, %v1124_v50  ;;  %v1194_v1 = vadd.f32 %v1193_v59, %v1192_v51 }
 0x1bd   : > { %v1127_v62 = vpop.f32.mrf.mxu0  ;;  %v1195_v63 = vpop.f32.mrf.mxu1 }
 0x1be   : > { %979 = vst.msk [vmem:[%s1698_s27 + $0x20] sm:$0xff] %vm974_vm1, %v936_v60  ;;  %v816_v0 = vadd.f32 %v1126_v61, %v1690_v54 }
 0x1bf   : > { %v1128_v2 = vpop.f32.mrf.mxu0  ;;  %v1196_v3 = vpop.f32.mrf.mxu1 }
 0x1c0   : > { %v941_v4 = vadd.f32 %v1194_v1, %v816_v0  ;;  %v1129_v5 = vadd.f32 %v1128_v2, %v1127_v62  ;;  %v1197_v9 = vadd.f32 %v1196_v3, %v1195_v63 }
 0x1c1   : > { %v1130_v6 = vpop.f32.mrf.mxu0  ;;  %v1198_v7 = vpop.f32.mrf.mxu1 }
 0x1c2   : > { %980 = vst.msk [vmem:[%s1698_s27 + $0x28] sm:$0xff] %vm974_vm1, %v941_v4  ;;  %v821_v8 = vadd.f32 %v1129_v5, %v1690_v54 }
 0x1c3   : > { %v1131_v10 = vpop.f32.mrf.mxu0  ;;  %v1199_v11 = vpop.f32.mrf.mxu1 }
 0x1c4   : > { %v946_v12 = vadd.f32 %v1197_v9, %v821_v8  ;;  %v1132_v13 = vadd.f32 %v1131_v10, %v1130_v6  ;;  %v1200_v53 = vadd.f32 %v1199_v11, %v1198_v7 }
 0x1c5   : > { %v1133_v14 = vpop.f32.mrf.mxu0  ;;  %v1201_v15 = vpop.f32.mrf.mxu1 }
 0x1c6   : > { %981 = vst.msk [vmem:[%s1698_s27 + $0x30] sm:$0xff] %vm974_vm1, %v946_v12  ;;  %v826_v52 = vadd.f32 %v1132_v13, %v1690_v54 }
 0x1c7   : > { %v1134_v55 = vpop.f32.mrf.mxu0  ;;  %v1202_v16 = vpop.f32.mrf.mxu1 }
 0x1c8   : > { %v951_v17 = vadd.f32 %v1200_v53, %v826_v52  ;;  %v1135_v18 = vadd.f32 %v1134_v55, %v1133_v14  ;;  %v1203_v22 = vadd.f32 %v1202_v16, %v1201_v15 }
 0x1c9   : > { %v1136_v19 = vpop.f32.mrf.mxu0  ;;  %v1204_v20 = vpop.f32.mrf.mxu1 }
 0x1ca   : > { %982 = vst.msk [vmem:[%s1698_s27 + $0x38] sm:$0xff] %vm974_vm1, %v951_v17  ;;  %v831_v21 = vadd.f32 %v1135_v18, %v1690_v54 }
 0x1cb   : > { %v1137_v23 = vpop.f32.mrf.mxu0  ;;  %v1205_v24 = vpop.f32.mrf.mxu1 }
 0x1cc   : > { %v956_v25 = vadd.f32 %v1203_v22, %v831_v21  ;;  %v1138_v26 = vadd.f32 %v1137_v23, %v1136_v19  ;;  %v1206_v30 = vadd.f32 %v1205_v24, %v1204_v20 }
 0x1cd   : > { %v1139_v27 = vpop.f32.mrf.mxu0  ;;  %v1207_v28 = vpop.f32.mrf.mxu1 }
 0x1ce   : > { %983 = vst.msk [vmem:[%s1698_s27 + $0x40] sm:$0xff] %vm974_vm1, %v956_v25  ;;  %v836_v29 = vadd.f32 %v1138_v26, %v1690_v54 }
 0x1cf   : > { %v1140_v31 = vpop.f32.mrf.mxu0  ;;  %v1208_v32 = vpop.f32.mrf.mxu1 }
 0x1d0   : > { %v961_v33 = vadd.f32 %v1206_v30, %v836_v29  ;;  %v1141_v34 = vadd.f32 %v1140_v31, %v1139_v27  ;;  %v1209_v38 = vadd.f32 %v1208_v32, %v1207_v28 }
 0x1d1   : > { %v1142_v35 = vpop.f32.mrf.mxu0  ;;  %v1210_v36 = vpop.f32.mrf.mxu1 }
 0x1d2   : > { %984 = vst.msk [vmem:[%s1698_s27 + $0x48] sm:$0xff] %vm974_vm1, %v961_v33  ;;  %v841_v37 = vadd.f32 %v1141_v34, %v1690_v54 }
 0x1d3   : > { %v1143_v39 = vpop.f32.mrf.mxu0  ;;  %v1211_v40 = vpop.f32.mrf.mxu1 }
 0x1d4   : > { %v966_v41 = vadd.f32 %v1209_v38, %v841_v37  ;;  %v1144_v42 = vadd.f32 %v1143_v39, %v1142_v35  ;;  %v1212_v44 = vadd.f32 %v1211_v40, %v1210_v36 }
 0x1d6   : > { %985 = vst.msk [vmem:[%s1698_s27 + $0x50] sm:$0xff] %vm974_vm1, %v966_v41  ;;  %v846_v43 = vadd.f32 %v1144_v42, %v1690_v54 }
 0x1d8   : > { %v971_v45 = vadd.f32 %v1212_v44, %v846_v43 }
 0x1da   : > { %986 = vst.msk [vmem:[%s1698_s27 + $0x58] sm:$0xff] %vm974_vm1, %v971_v45 }
 0x1db PF: > { %s15_s18 = sadd.s32 1, %s1228_s18  }
 0x1dc   : > { %p12_p4 = scmp.ge.s32.totalorder %s15_s18, 6  }
 0x1de   :  { %14 = sbr.rel (!%p12_p4) target bundleno = 1 (0x1), region = 70 }

// kernel: tpu_custom_call.1
= control target key start
LH: loop header
LB: loop body
LE: loop exit
PB: predicated region body
PF: predicated region fallthrough
CT: control target
= control target key end

     0   :  { %s1261_s18 = smov 0   ;;  %s1738_s0 = inlined_call_operand.vmem [shape: f32[384,64], index: 0, kind: input, shape index: {}]   ;;  %s1739_s1 = inlined_call_operand.vmem [shape: f32[64,512], index: 1, kind: input, shape index: {}]   ;;  %s1740_s2 = inlined_call_operand.vmem [shape: f32[1,512], index: 2, kind: input, shape index: {}]   ;;  %s1741_s3 = inlined_call_operand.vmem [shape: f32[512,96], index: 3, kind: input, shape index: {}]   ;;  %s1742_s4 = inlined_call_operand.vmem [shape: f32[1,96], index: 4, kind: input, shape index: {}]   ;;  %s1743_s5 = inlined_call_operand.vmem [shape: f32[384,96], index: 5, kind: output, shape index: {}]  }
   0x1 LB: > { %s1043_s19 = sadd.s32 4294967295, %s1228_s18   ;;  %p1047_p0 = scmp.ge.s32.totalorder %s1228_s18, 1  ;;  %s1228_s18 = sphi %s1261_s18, %s15_s18  }
   0x2   : > { %p188_p1 = scmp.lt.s32.totalorder %s1228_s18, 5 }
   0x4   : > { %p189_p2 = pnand %p1047_p0, %p188_p1 }
   0x5   : > { %s216_s26 = smul.u32 (!%p189_p2), 12, %s1043_s19 }
   0x6   : > { %192 = sbr.rel (%p189_p2) target bundleno = 475 (0x1db), region = 40 }
   0x7   : > { %p217_p3 = scmp.lt.s32.totalorder (!%p189_p2), %s216_s26, 47 }
   0xb   : > { %v269_v0 = vld [vmem:[%s1739_s1 + $0xe8] sm:$0xff]  ;;  %v271_v1 = vld [vmem:[%s1739_s1 + $0xf8] sm:$0xff]  ;;  %v268_v2 = vld [vmem:[%s1739_s1 + $0xe0] sm:$0xff]  ;;  %s1745_s26 = smov (!%p217_p3, %s216_s26), 47  ;;  %vm294_vm0 = vcmask 523264   ;;  %v1230_v33 = vmov 0.0  }
   0xc   : > { %347 = vmatprep.subr.mxu0 %v269_v0  ;;  %484 = vmatprep.subr.mxu1 %v271_v1  ;;  %v270_v3 = vld [vmem:[%s1739_s1 + $0xf0] sm:$0xff]  ;;  %v265_v4 = vld [vmem:[%s1739_s1 + $0xc8] sm:$0xff]  ;;  %v267_v5 = vld [vmem:[%s1739_s1 + $0xd8] sm:$0xff]  ;;  %s1048_s22 = sshll.u32 %s1745_s26, 3  ;;  %vm974_vm1 = vcmask 785408  }
   0xd   : > { %348 = vmatpush1.msra.mxu0 %v268_v2  ;;  %485 = vmatpush1.msra.mxu1 %v270_v3  ;;  %v264_v6 = vld [vmem:[%s1739_s1 + $0xc0] sm:$0xff]  ;;  %v266_v7 = vld [vmem:[%s1739_s1 + $0xd0] sm:$0xff]  ;;  %v261_v8 = vld [vmem:[%s1739_s1 + $0xa8] sm:$0xff]  ;;  %s1368_s13 = scalar_lea.vmem %s1738_s0, %s1048_s22  ;;  %s1698_s27 = scalar_lea.vmem %s1743_s5, %s1048_s22 }
   0xe   : > { %349 = vmatprep.subr.mxu0 %v265_v4  ;;  %486 = vmatprep.subr.mxu1 %v267_v5  ;;  %v263_v9 = vld [vmem:[%s1739_s1 + $0xb8] sm:$0xff]  ;;  %v260_v10 = vld [vmem:[%s1739_s1 + $0xa0] sm:$0xff]  ;;  %v262_v11 = vld [vmem:[%s1739_s1 + $0xb0] sm:$0xff] }
   0xf   : > { %350 = vmatpush1.msra.mxu0 %v264_v6  ;;  %487 = vmatpush1.msra.mxu1 %v266_v7  ;;  %v257_v12 = vld [vmem:[%s1739_s1 + $0x88] sm:$0xff]  ;;  %v259_v13 = vld [vmem:[%s1739_s1 + $0x98] sm:$0xff]  ;;  %v256_v14 = vld [vmem:[%s1739_s1 + $0x80] sm:$0xff] }
  0x10   : > { %351 = vmatprep.subr.mxu0 %v261_v8  ;;  %488 = vmatprep.subr.mxu1 %v263_v9  ;;  %v258_v15 = vld [vmem:[%s1739_s1 + $0x90] sm:$0xff]  ;;  %v253_v16 = vld [vmem:[%s1739_s1 + $0x68] sm:$0xff]  ;;  %v255_v17 = vld [vmem:[%s1739_s1 + $0x78] sm:$0xff] }
  0x11   : > { %352 = vmatpush1.msra.mxu0 %v260_v10  ;;  %489 = vmatpush1.msra.mxu1 %v262_v11  ;;  %v252_v18 = vld [vmem:[%s1739_s1 + $0x60] sm:$0xff]  ;;  %v254_v19 = vld [vmem:[%s1739_s1 + $0x70] sm:$0xff]  ;;  %v249_v20 = vld [vmem:[%s1739_s1 + $0x48] sm:$0xff] }
  0x12   : > { %353 = vmatprep.subr.mxu0 %v257_v12  ;;  %490 = vmatprep.subr.mxu1 %v259_v13  ;;  %v251_v21 = vld [vmem:[%s1739_s1 + $0x58] sm:$0xff]  ;;  %v248_v22 = vld [vmem:[%s1739_s1 + $0x40] sm:$0xff]  ;;  %v250_v23 = vld [vmem:[%s1739_s1 + $0x50] sm:$0xff] }
  0x13   : > { %354 = vmatpush1.msra.mxu0 %v256_v14  ;;  %491 = vmatpush1.msra.mxu1 %v258_v15  ;;  %v245_v24 = vld [vmem:[%s1739_s1 + $0x28] sm:$0xff]  ;;  %v247_v25 = vld [vmem:[%s1739_s1 + $0x38] sm:$0xff]  ;;  %v244_v26 = vld [vmem:[%s1739_s1 + $0x20] sm:$0xff] }
  0x14   : > { %355 = vmatprep.subr.mxu0 %v253_v16  ;;  %492 = vmatprep.subr.mxu1 %v255_v17  ;;  %v246_v27 = vld [vmem:[%s1739_s1 + $0x30] sm:$0xff]  ;;  %v241_v28 = vld [vmem:[%s1739_s1 + $0x8] sm:$0xff]  ;;  %v243_v29 = vld [vmem:[%s1739_s1 + $0x18] sm:$0xff] }
  0x15   : > { %356 = vmatpush1.msra.mxu0 %v252_v18  ;;  %493 = vmatpush1.msra.mxu1 %v254_v19  ;;  %v240_v30 = vld [vmem:[%s1739_s1] sm:$0xff]  ;;  %v242_v31 = vld [vmem:[%s1739_s1 + $0x10] sm:$0xff]  ;;  %v684_v34 = vld [vmem:[%s1741_s3 + $0xf8] sm:$0xff] }
  0x16   : > { %357 = vmatprep.subr.mxu0 %v249_v20  ;;  %494 = vmatprep.subr.mxu1 %v251_v21  ;;  %v228_v32 = vld [vmem:[%s1368_s13] sm:$0xff]  ;;  %v716_v35 = vld [vmem:[%s1741_s3 + $0x1f8] sm:$0xff]  ;;  %v229_v38 = vld [vmem:[%s1368_s13 + $0x8] sm:$0xff] }
  0x17   : > { %358 = vmatpush1.msra.mxu0 %v248_v22  ;;  %495 = vmatpush1.msra.mxu1 %v250_v23  ;;  %v668_v36 = vld [vmem:[%s1741_s3 + $0x78] sm:$0xff]  ;;  %v683_v39 = vld [vmem:[%s1741_s3 + $0xf0] sm:$0xff]  ;;  %v682_v44 = vld [vmem:[%s1741_s3 + $0xe8] sm:$0xff] }
  0x18   : > { %359 = vmatprep.subr.mxu0 %v245_v24  ;;  %496 = vmatprep.subr.mxu1 %v247_v25  ;;  %v700_v37 = vld [vmem:[%s1741_s3 + $0x178] sm:$0xff]  ;;  %v715_v40 = vld [vmem:[%s1741_s3 + $0x1f0] sm:$0xff]  ;;  %v714_v45 = vld [vmem:[%s1741_s3 + $0x1e8] sm:$0xff] }
  0x19   : > { %360 = vmatpush1.msra.mxu0 %v244_v26  ;;  %497 = vmatpush1.msra.mxu1 %v246_v27  ;;  %v667_v41 = vld [vmem:[%s1741_s3 + $0x70] sm:$0xff]  ;;  %v666_v46 = vld [vmem:[%s1741_s3 + $0x68] sm:$0xff]  ;;  %v231_v48 = vld [vmem:[%s1368_s13 + $0x18] sm:$0xff] }
  0x1a   : > { %361 = vmatprep.subr.mxu0 %v241_v28  ;;  %498 = vmatprep.subr.mxu1 %v243_v29  ;;  %v699_v42 = vld [vmem:[%s1741_s3 + $0x170] sm:$0xff]  ;;  %v698_v47 = vld [vmem:[%s1741_s3 + $0x168] sm:$0xff]  ;;  %v681_v49 = vld [vmem:[%s1741_s3 + $0xe0] sm:$0xff] }
  0x1b   : > { %362 = vmatpush1.msra.mxu0 %v240_v30  ;;  %395 = vmatprep.mubr.f32.mxu0 %v1230_v33  ;;  %v230_v43 = vld [vmem:[%s1368_s13 + $0x10] sm:$0xff]  ;;  %v713_v50 = vld [vmem:[%s1741_s3 + $0x1e0] sm:$0xff]  ;;  %v680_v54 = vld [vmem:[%s1741_s3 + $0xd8] sm:$0xff] }
  0x1c   : > { %499 = vmatpush1.msra.mxu1 %v242_v31  ;;  %532 = vmatprep.mubr.f32.mxu1 %v1230_v33  ;;  %v665_v51 = vld [vmem:[%s1741_s3 + $0x60] sm:$0xff]  ;;  %v712_v55 = vld [vmem:[%s1741_s3 + $0x1d8] sm:$0xff]  ;;  %v233_v58 = vld [vmem:[%s1368_s13 + $0x28] sm:$0xff] }
  0x1d   : > { %1050 = vmatmul.mubr.msk.f32.vlgmr.msra.gmra.mxu0 %vm294_vm0, %v228_v32  ;;  %1062 = vmatmul.mubr.msk.f32.vlgmr.msra.gmra.mxu1 %vm294_vm0, %v228_v32  ;;  %v697_v52 = vld [vmem:[%s1741_s3 + $0x160] sm:$0xff]  ;;  %v664_v56 = vld [vmem:[%s1741_s3 + $0x58] sm:$0xff]  ;;  %v679_v59 = vld [vmem:[%s1741_s3 + $0xd0] sm:$0xff] }
  0x1e   : > { %401 = vmatprep.mubr.f32.mxu0 %v1230_v33  ;;  %538 = vmatprep.mubr.f32.mxu1 %v1230_v33  ;;  %v232_v53 = vld [vmem:[%s1368_s13 + $0x20] sm:$0xff]  ;;  %v696_v57 = vld [vmem:[%s1741_s3 + $0x158] sm:$0xff]  ;;  %v711_v60 = vld [vmem:[%s1741_s3 + $0x1d0] sm:$0xff] }
  0x1f   : > { %1077 = vmatprep.subr.mxu0 %v684_v34  ;;  %1145 = vmatprep.subr.mxu1 %v716_v35  ;;  %v663_v61 = vld [vmem:[%s1741_s3 + $0x50] sm:$0xff]  ;;  %v678_v0 = vld [vmem:[%s1741_s3 + $0xc8] sm:$0xff]  ;;  %v235_v4 = vld [vmem:[%s1368_s13 + $0x38] sm:$0xff] }
  0x20   : > { %1078 = vmatpush3.msra.mxu0 %v668_v36  ;;  %1146 = vmatpush3.msra.mxu1 %v700_v37  ;;  %v695_v62 = vld [vmem:[%s1741_s3 + $0x150] sm:$0xff]  ;;  %v710_v1 = vld [vmem:[%s1741_s3 + $0x1c8] sm:$0xff]  ;;  %v677_v5 = vld [vmem:[%s1741_s3 + $0xc0] sm:$0xff] }
  0x21   : > { %1051 = vmatmul.mubr.msk.f32.gmra.mxu0 %vm294_vm0, %v229_v38  ;;  %1063 = vmatmul.mubr.msk.f32.gmra.mxu1 %vm294_vm0, %v229_v38  ;;  %v234_v63 = vld [vmem:[%s1368_s13 + $0x30] sm:$0xff]  ;;  %v662_v2 = vld [vmem:[%s1741_s3 + $0x48] sm:$0xff]  ;;  %v709_v6 = vld [vmem:[%s1741_s3 + $0x1c0] sm:$0xff] }
  0x22   : > { %407 = vmatprep.mubr.f32.mxu0 %v1230_v33  ;;  %544 = vmatprep.mubr.f32.mxu1 %v1230_v33  ;;  %v694_v3 = vld [vmem:[%s1741_s3 + $0x148] sm:$0xff]  ;;  %v661_v7 = vld [vmem:[%s1741_s3 + $0x40] sm:$0xff]  ;;  %v676_v10 = vld [vmem:[%s1741_s3 + $0xb8] sm:$0xff] }
  0x23   : > { %1079 = vmatprep.subr.mxu0 %v683_v39  ;;  %1147 = vmatprep.subr.mxu1 %v715_v40  ;;  %v693_v8 = vld [vmem:[%s1741_s3 + $0x140] sm:$0xff]  ;;  %v708_v11 = vld [vmem:[%s1741_s3 + $0x1b8] sm:$0xff]  ;;  %v237_v14 = vld [vmem:[%s1368_s13 + $0x48] sm:$0xff] }
  0x24   : > { %1080 = vmatpush3.msra.mxu0 %v667_v41  ;;  %1148 = vmatpush3.msra.mxu1 %v699_v42  ;;  %v236_v9 = vld [vmem:[%s1368_s13 + $0x40] sm:$0xff]  ;;  %v660_v12 = vld [vmem:[%s1741_s3 + $0x38] sm:$0xff]  ;;  %v675_v15 = vld [vmem:[%s1741_s3 + $0xb0] sm:$0xff] }
  0x25   : > { %1052 = vmatmul.mubr.msk.f32.gmra.mxu0 %vm294_vm0, %v230_v43  ;;  %1064 = vmatmul.mubr.msk.f32.gmra.mxu1 %vm294_vm0, %v230_v43  ;;  %v692_v13 = vld [vmem:[%s1741_s3 + $0x138] sm:$0xff]  ;;  %v707_v16 = vld [vmem:[%s1741_s3 + $0x1b0] sm:$0xff]  ;;  %v674_v20 = vld [vmem:[%s1741_s3 + $0xa8] sm:$0xff] }
  0x26   : > { %413 = vmatprep.mubr.f32.mxu0 %v1230_v33  ;;  %550 = vmatprep.mubr.f32.mxu1 %v1230_v33  ;;  %v659_v17 = vld [vmem:[%s1741_s3 + $0x30] sm:$0xff]  ;;  %v706_v21 = vld [vmem:[%s1741_s3 + $0x1a8] sm:$0xff]  ;;  %v239_v24 = vld [vmem:[%s1368_s13 + $0x58] sm:$0xff] }
  0x27   : > { %1081 = vmatprep.subr.mxu0 %v682_v44  ;;  %1149 = vmatprep.subr.mxu1 %v714_v45  ;;  %v691_v18 = vld [vmem:[%s1741_s3 + $0x130] sm:$0xff]  ;;  %v658_v22 = vld [vmem:[%s1741_s3 + $0x28] sm:$0xff]  ;;  %v673_v25 = vld [vmem:[%s1741_s3 + $0xa0] sm:$0xff]  ;;  %v274_v45 = vlaneseq }
  0x28   : > { %1082 = vmatpush3.msra.mxu0 %v666_v46  ;;  %1150 = vmatpush3.msra.mxu1 %v698_v47  ;;  %v238_v19 = vld [vmem:[%s1368_s13 + $0x50] sm:$0xff]  ;;  %v690_v23 = vld [vmem:[%s1741_s3 + $0x128] sm:$0xff]  ;;  %v705_v26 = vld [vmem:[%s1741_s3 + $0x1a0] sm:$0xff] }
  0x29   : > { %1053 = vmatmul.mubr.msk.f32.gmra.mxu0 %vm294_vm0, %v231_v48  ;;  %1065 = vmatmul.mubr.msk.f32.gmra.mxu1 %vm294_vm0, %v231_v48  ;;  %v657_v27 = vld [vmem:[%s1741_s3 + $0x20] sm:$0xff]  ;;  %v672_v29 = vld [vmem:[%s1741_s3 + $0x98] sm:$0xff]  ;;  %v655_v34 = vld [vmem:[%s1741_s3 + $0x10] sm:$0xff]  ;;  %v275_v46 = vshrl.u32 %v274_v45, 7 }
  0x2a   : > { %419 = vmatprep.mubr.f32.mxu0 %v1230_v33  ;;  %556 = vmatprep.mubr.f32.mxu1 %v1230_v33  ;;  %v689_v28 = vld [vmem:[%s1741_s3 + $0x120] sm:$0xff]  ;;  %v704_v30 = vld [vmem:[%s1741_s3 + $0x198] sm:$0xff]  ;;  %v703_v35 = vld [vmem:[%s1741_s3 + $0x190] sm:$0xff] }
  0x2b   : > { %1083 = vmatprep.subr.mxu0 %v681_v49  ;;  %1151 = vmatprep.subr.mxu1 %v713_v50  ;;  %v656_v31 = vld [vmem:[%s1741_s3 + $0x18] sm:$0xff]  ;;  %v687_v36 = vld [vmem:[%s1741_s3 + $0x110] sm:$0xff]  ;;  %v670_v37 = vld [vmem:[%s1741_s3 + $0x88] sm:$0xff]  ;;  %v284_v47 = vsub.s32 2, %v275_v46  ;;  %v276_v48 = vsub.s32 0, %v275_v46  ;;  %v280_v50 = vsub.s32 1, %v275_v46 }
  0x2c   : > { %1084 = vmatpush3.msra.mxu0 %v665_v51  ;;  %1152 = vmatpush3.msra.mxu1 %v697_v52  ;;  %v688_v32 = vld [vmem:[%s1741_s3 + $0x118] sm:$0xff]  ;;  %v702_v38 = vld [vmem:[%s1741_s3 + $0x188] sm:$0xff]  ;;  %v669_v41 = vld [vmem:[%s1741_s3 + $0x80] sm:$0xff]  ;;  %v288_v51 = vsub.s32 3, %v275_v46 }
  0x2d   : > { %1054 = vmatmul.mubr.msk.f32.gmra.mxu0 %vm294_vm0, %v232_v53  ;;  %1066 = vmatmul.mubr.msk.f32.gmra.mxu1 %vm294_vm0, %v232_v53  ;;  %v654_v39 = vld [vmem:[%s1741_s3 + $0x8] sm:$0xff]  ;;  %v701_v42 = vld [vmem:[%s1741_s3 + $0x180] sm:$0xff] }
  0x2e   : > { %425 = vmatprep.mubr.f32.mxu0 %v1230_v33  ;;  %562 = vmatprep.mubr.f32.mxu1 %v1230_v33  ;;  %v686_v40 = vld [vmem:[%s1741_s3 + $0x108] sm:$0xff]  ;;  %v653_v43 = vld [vmem:[%s1741_s3] sm:$0xff] }
  0x2f   : > { %1085 = vmatprep.subr.mxu0 %v680_v54  ;;  %1153 = vmatprep.subr.mxu1 %v712_v55  ;;  %v685_v44 = vld [vmem:[%s1741_s3 + $0x100] sm:$0xff] }
  0x30   : > { %1086 = vmatpush3.msra.mxu0 %v664_v56  ;;  %1154 = vmatpush3.msra.mxu1 %v696_v57  ;;  %v272_v49 = vld [vmem:[%s1740_s2] sm:$0xf] }
  0x31   : > { %1055 = vmatmul.mubr.msk.f32.gmra.mxu0 %vm294_vm0, %v233_v58  ;;  %1067 = vmatmul.mubr.msk.f32.gmra.mxu1 %vm294_vm0, %v233_v58  ;;  %v1631_v52 = vrot.slane %v272_v49, %v284_v47  ;;  %v1633_v53 = vrot.slane %v272_v49, %v276_v48  ;;  %v1635_v54 = vrot.slane %v272_v49, %v280_v50 }
  0x32   : > { %431 = vmatprep.mubr.f32.mxu0 %v1230_v33  ;;  %568 = vmatprep.mubr.f32.mxu1 %v1230_v33  ;;  %v1637_v55 = vrot.slane %v272_v49, %v288_v51 }
  0x33   : > { %1087 = vmatprep.subr.mxu0 %v679_v59  ;;  %1155 = vmatprep.subr.mxu1 %v711_v60 }
  0x34   : > { %1088 = vmatpush3.msra.mxu0 %v663_v61  ;;  %1156 = vmatpush3.msra.mxu1 %v695_v62 }
  0x35   : > { %1056 = vmatmul.mubr.msk.f32.gmra.mxu0 %vm294_vm0, %v234_v63  ;;  %1068 = vmatmul.mubr.msk.f32.gmra.mxu1 %vm294_vm0, %v234_v63 }
  0x36   : > { %437 = vmatprep.mubr.f32.mxu0 %v1230_v33  ;;  %574 = vmatprep.mubr.f32.mxu1 %v1230_v33 }
  0x37   : > { %1089 = vmatprep.subr.mxu0 %v678_v0  ;;  %1157 = vmatprep.subr.mxu1 %v710_v1 }
  0x38   : > { %1090 = vmatpush3.msra.mxu0 %v662_v2  ;;  %1158 = vmatpush3.msra.mxu1 %v694_v3 }
  0x39   : > { %1057 = vmatmul.mubr.msk.f32.gmra.mxu0 %vm294_vm0, %v235_v4  ;;  %1069 = vmatmul.mubr.msk.f32.gmra.mxu1 %vm294_vm0, %v235_v4 }
  0x3a   : > { %443 = vmatprep.mubr.f32.mxu0 %v1230_v33  ;;  %580 = vmatprep.mubr.f32.mxu1 %v1230_v33 }
  0x3b   : > { %1091 = vmatprep.subr.mxu0 %v677_v5  ;;  %1159 = vmatprep.subr.mxu1 %v709_v6 }
  0x3c   : > { %1092 = vmatpush3.msra.mxu0 %v661_v7  ;;  %1160 = vmatpush3.msra.mxu1 %v693_v8 }
  0x3d   : > { %1058 = vmatmul.mubr.msk.f32.gmra.mxu0 %vm294_vm0, %v236_v9  ;;  %1070 = vmatmul.mubr.msk.f32.gmra.mxu1 %vm294_vm0, %v236_v9 }
  0x3e   : > { %449 = vmatprep.mubr.f32.mxu0 %v1230_v33  ;;  %586 = vmatprep.mubr.f32.mxu1 %v1230_v33 }
  0x3f   : > { %1093 = vmatprep.subr.mxu0 %v676_v10  ;;  %1161 = vmatprep.subr.mxu1 %v708_v11 }
  0x40   : > { %1094 = vmatpush3.msra.mxu0 %v660_v12  ;;  %1162 = vmatpush3.msra.mxu1 %v692_v13 }
  0x41   : > { %1059 = vmatmul.mubr.msk.f32.gmra.mxu0 %vm294_vm0, %v237_v14  ;;  %1071 = vmatmul.mubr.msk.f32.gmra.mxu1 %vm294_vm0, %v237_v14 }
  0x42   : > { %455 = vmatprep.mubr.f32.mxu0 %v1230_v33  ;;  %592 = vmatprep.mubr.f32.mxu1 %v1230_v33 }
  0x43   : > { %1095 = vmatprep.subr.mxu0 %v675_v15  ;;  %1163 = vmatprep.subr.mxu1 %v707_v16 }
  0x44   : > { %1096 = vmatpush3.msra.mxu0 %v659_v17  ;;  %1164 = vmatpush3.msra.mxu1 %v691_v18 }
  0x45   : > { %1060 = vmatmul.mubr.msk.f32.gmra.mxu0 %vm294_vm0, %v238_v19  ;;  %1072 = vmatmul.mubr.msk.f32.gmra.mxu1 %vm294_vm0, %v238_v19 }
  0x46   : > { %461 = vmatprep.mubr.f32.mxu0 %v1230_v33  ;;  %598 = vmatprep.mubr.f32.mxu1 %v1230_v33  ;;  %v671_v33 = vld [vmem:[%s1741_s3 + $0x90] sm:$0xff] }
  0x47   : > { %1097 = vmatprep.subr.mxu0 %v674_v20  ;;  %1165 = vmatprep.subr.mxu1 %v706_v21 }
  0x48   : > { %1098 = vmatpush3.msra.mxu0 %v658_v22  ;;  %1166 = vmatpush3.msra.mxu1 %v690_v23 }
  0x49   : > { %1061 = vmatmul.mubr.msk.f32.gmra.mxu0 %vm294_vm0, %v239_v24  ;;  %1073 = vmatmul.mubr.msk.f32.gmra.mxu1 %vm294_vm0, %v239_v24 }
  0x4a   : > { %1099 = vmatprep.subr.mxu0 %v673_v25  ;;  %1167 = vmatprep.subr.mxu1 %v705_v26 }
  0x4b   : > { %1100 = vmatpush3.msra.mxu0 %v657_v27  ;;  %1168 = vmatpush3.msra.mxu1 %v689_v28 }
  0x4c   : > { %1101 = vmatprep.subr.mxu0 %v672_v29  ;;  %1169 = vmatprep.subr.mxu1 %v704_v30 }
  0x4d   : > { %1102 = vmatpush3.msra.mxu0 %v656_v31  ;;  %1170 = vmatpush3.msra.mxu1 %v688_v32 }
  0x4e   : > { %1103 = vmatprep.subr.mxu0 %v671_v33  ;;  %1171 = vmatprep.subr.mxu1 %v703_v35 }
  0x4f   : > { %1104 = vmatpush3.msra.mxu0 %v655_v34  ;;  %1172 = vmatpush3.msra.mxu1 %v687_v36 }
  0x50   : > { %1105 = vmatprep.subr.mxu0 %v670_v37  ;;  %1173 = vmatprep.subr.mxu1 %v702_v38 }
  0x51   : > { %1106 = vmatpush3.msra.mxu0 %v654_v39  ;;  %1174 = vmatpush3.msra.mxu1 %v686_v40 }
  0x52   : > { %1107 = vmatprep.subr.mxu0 %v669_v41  ;;  %1175 = vmatprep.subr.mxu1 %v701_v42 }
  0x53   : > { %1108 = vmatpush3.msra.mxu0 %v653_v43  ;;  %1176 = vmatpush3.msra.mxu1 %v685_v44 }
  0xdd   : > { %v397_v56 = vpop.f32.mrf.mxu0  ;;  %v534_v57 = vpop.f32.mrf.mxu1 }
  0xde   : > { %v535_v58 = vadd.f32 %v534_v57, %v1631_v52  ;;  %v398_v59 = vadd.f32 %v397_v56, %v1633_v53 }
  0xdf   : > { %v399_v60 = vpop.f32.mrf.mxu0  ;;  %v536_v61 = vpop.f32.mrf.mxu1 }
  0xe0   : > { %v400_v62 = vadd.f32 %v399_v60, %v1635_v54  ;;  %v537_v63 = vadd.f32 %v536_v61, %v1637_v55  ;;  %v607_v0 = vmax.f32 %v535_v58, 0.0  ;;  %v605_v6 = vmax.f32 %v398_v59, 0.0 }
  0xe1   : > { %v403_v1 = vpop.f32.mrf.mxu0  ;;  %v540_v2 = vpop.f32.mrf.mxu1 }
  0xe2   : > { %v606_v3 = vmax.f32 %v400_v62, 0.0  ;;  %v608_v4 = vmax.f32 %v537_v63, 0.0  ;;  %v541_v5 = vadd.f32 %v540_v2, %v1631_v52  ;;  %v404_v7 = vadd.f32 %v403_v1, %v1633_v53 }
  0xe3   : > { %v405_v8 = vpop.f32.mrf.mxu0  ;;  %v542_v9 = vpop.f32.mrf.mxu1 }
  0xe4   : > { %v406_v10 = vadd.f32 %v405_v8, %v1635_v54  ;;  %v543_v11 = vadd.f32 %v542_v9, %v1637_v55  ;;  %788 = vmatprep.mubr.f32.mxu0 %v606_v3  ;;  %913 = vmatprep.mubr.f32.mxu1 %v608_v4  ;;  %v611_v12 = vmax.f32 %v541_v5, 0.0  ;;  %v609_v18 = vmax.f32 %v404_v7, 0.0 }
  0xe5   : > { %v409_v13 = vpop.f32.mrf.mxu0  ;;  %v546_v14 = vpop.f32.mrf.mxu1  ;;  %789 = vmatmul.mubr.f32.vlgmr.msra.gmra.mxu0 %v605_v6  ;;  %914 = vmatmul.mubr.f32.vlgmr.msra.gmra.mxu1 %v607_v0 }
  0xe6   : > { %v610_v15 = vmax.f32 %v406_v10, 0.0  ;;  %v612_v16 = vmax.f32 %v543_v11, 0.0  ;;  %v547_v17 = vadd.f32 %v546_v14, %v1631_v52  ;;  %v410_v19 = vadd.f32 %v409_v13, %v1633_v53 }
  0xe7   : > { %v411_v20 = vpop.f32.mrf.mxu0  ;;  %v548_v21 = vpop.f32.mrf.mxu1 }
  0xe8   : > { %v412_v22 = vadd.f32 %v411_v20, %v1635_v54  ;;  %v549_v23 = vadd.f32 %v548_v21, %v1637_v55  ;;  %793 = vmatprep.mubr.f32.mxu0 %v610_v15  ;;  %918 = vmatprep.mubr.f32.mxu1 %v612_v16  ;;  %v615_v24 = vmax.f32 %v547_v17, 0.0  ;;  %v613_v30 = vmax.f32 %v410_v19, 0.0 }
  0xe9   : > { %v415_v25 = vpop.f32.mrf.mxu0  ;;  %v552_v26 = vpop.f32.mrf.mxu1  ;;  %794 = vmatmul.mubr.f32.gmra.mxu0 %v609_v18  ;;  %919 = vmatmul.mubr.f32.gmra.mxu1 %v611_v12 }
  0xea   : > { %v614_v27 = vmax.f32 %v412_v22, 0.0  ;;  %v616_v28 = vmax.f32 %v549_v23, 0.0  ;;  %v553_v29 = vadd.f32 %v552_v26, %v1631_v52  ;;  %v416_v31 = vadd.f32 %v415_v25, %v1633_v53 }
  0xeb   : > { %v417_v32 = vpop.f32.mrf.mxu0  ;;  %v554_v33 = vpop.f32.mrf.mxu1 }
  0xec   : > { %v418_v34 = vadd.f32 %v417_v32, %v1635_v54  ;;  %v555_v35 = vadd.f32 %v554_v33, %v1637_v55  ;;  %798 = vmatprep.mubr.f32.mxu0 %v614_v27  ;;  %923 = vmatprep.mubr.f32.mxu1 %v616_v28  ;;  %v619_v36 = vmax.f32 %v553_v29, 0.0  ;;  %v617_v42 = vmax.f32 %v416_v31, 0.0 }
  0xed   : > { %v421_v37 = vpop.f32.mrf.mxu0  ;;  %v558_v38 = vpop.f32.mrf.mxu1  ;;  %799 = vmatmul.mubr.f32.gmra.mxu0 %v613_v30  ;;  %924 = vmatmul.mubr.f32.gmra.mxu1 %v615_v24 }
  0xee   : > { %v618_v39 = vmax.f32 %v418_v34, 0.0  ;;  %v620_v40 = vmax.f32 %v555_v35, 0.0  ;;  %v559_v41 = vadd.f32 %v558_v38, %v1631_v52  ;;  %v422_v43 = vadd.f32 %v421_v37, %v1633_v53 }
  0xef   : > { %v423_v44 = vpop.f32.mrf.mxu0  ;;  %v560_v45 = vpop.f32.mrf.mxu1 }
  0xf0   : > { %v424_v46 = vadd.f32 %v423_v44, %v1635_v54  ;;  %v561_v47 = vadd.f32 %v560_v45, %v1637_v55  ;;  %803 = vmatprep.mubr.f32.mxu0 %v618_v39  ;;  %928 = vmatprep.mubr.f32.mxu1 %v620_v40  ;;  %v623_v48 = vmax.f32 %v559_v41, 0.0  ;;  %v621_v58 = vmax.f32 %v422_v43, 0.0 }
  0xf1   : > { %v427_v49 = vpop.f32.mrf.mxu0  ;;  %v564_v50 = vpop.f32.mrf.mxu1  ;;  %804 = vmatmul.mubr.f32.gmra.mxu0 %v617_v42  ;;  %929 = vmatmul.mubr.f32.gmra.mxu1 %v619_v36 }
  0xf2   : > { %v622_v51 = vmax.f32 %v424_v46, 0.0  ;;  %v624_v56 = vmax.f32 %v561_v47, 0.0  ;;  %v565_v57 = vadd.f32 %v564_v50, %v1631_v52  ;;  %v428_v59 = vadd.f32 %v427_v49, %v1633_v53 }
  0xf3   : > { %v429_v60 = vpop.f32.mrf.mxu0  ;;  %v566_v61 = vpop.f32.mrf.mxu1 }
  0xf4   : > { %v430_v62 = vadd.f32 %v429_v60, %v1635_v54  ;;  %v567_v63 = vadd.f32 %v566_v61, %v1637_v55  ;;  %808 = vmatprep.mubr.f32.mxu0 %v622_v51  ;;  %933 = vmatprep.mubr.f32.mxu1 %v624_v56  ;;  %v627_v0 = vmax.f32 %v565_v57, 0.0  ;;  %v625_v6 = vmax.f32 %v428_v59, 0.0 }
  0xf5   : > { %v433_v1 = vpop.f32.mrf.mxu0  ;;  %v570_v2 = vpop.f32.mrf.mxu1  ;;  %809 = vmatmul.mubr.f32.gmra.mxu0 %v621_v58  ;;  %934 = vmatmul.mubr.f32.gmra.mxu1 %v623_v48 }
  0xf6   : > { %v626_v3 = vmax.f32 %v430_v62, 0.0  ;;  %v628_v4 = vmax.f32 %v567_v63, 0.0  ;;  %v571_v5 = vadd.f32 %v570_v2, %v1631_v52  ;;  %v434_v7 = vadd.f32 %v433_v1, %v1633_v53 }
  0xf7   : > { %v435_v8 = vpop.f32.mrf.mxu0  ;;  %v572_v9 = vpop.f32.mrf.mxu1 }
  0xf8   : > { %v436_v10 = vadd.f32 %v435_v8, %v1635_v54  ;;  %v573_v11 = vadd.f32 %v572_v9, %v1637_v55  ;;  %813 = vmatprep.mubr.f32.mxu0 %v626_v3  ;;  %938 = vmatprep.mubr.f32.mxu1 %v628_v4  ;;  %v631_v12 = vmax.f32 %v571_v5, 0.0  ;;  %v629_v18 = vmax.f32 %v434_v7, 0.0 }
  0xf9   : > { %v439_v13 = vpop.f32.mrf.mxu0  ;;  %v576_v14 = vpop.f32.mrf.mxu1  ;;  %814 = vmatmul.mubr.f32.gmra.mxu0 %v625_v6  ;;  %939 = vmatmul.mubr.f32.gmra.mxu1 %v627_v0 }
  0xfa   : > { %v630_v15 = vmax.f32 %v436_v10, 0.0  ;;  %v632_v16 = vmax.f32 %v573_v11, 0.0  ;;  %v577_v17 = vadd.f32 %v576_v14, %v1631_v52  ;;  %v440_v19 = vadd.f32 %v439_v13, %v1633_v53 }
  0xfb   : > { %v441_v20 = vpop.f32.mrf.mxu0  ;;  %v578_v21 = vpop.f32.mrf.mxu1 }
  0xfc   : > { %v442_v22 = vadd.f32 %v441_v20, %v1635_v54  ;;  %v579_v23 = vadd.f32 %v578_v21, %v1637_v55  ;;  %818 = vmatprep.mubr.f32.mxu0 %v630_v15  ;;  %943 = vmatprep.mubr.f32.mxu1 %v632_v16  ;;  %v635_v24 = vmax.f32 %v577_v17, 0.0  ;;  %v633_v30 = vmax.f32 %v440_v19, 0.0 }
  0xfd   : > { %v445_v25 = vpop.f32.mrf.mxu0  ;;  %v582_v26 = vpop.f32.mrf.mxu1  ;;  %819 = vmatmul.mubr.f32.gmra.mxu0 %v629_v18  ;;  %944 = vmatmul.mubr.f32.gmra.mxu1 %v631_v12 }
  0xfe   : > { %v634_v27 = vmax.f32 %v442_v22, 0.0  ;;  %v636_v28 = vmax.f32 %v579_v23, 0.0  ;;  %v583_v29 = vadd.f32 %v582_v26, %v1631_v52  ;;  %v446_v31 = vadd.f32 %v445_v25, %v1633_v53 }
  0xff   : > { %v447_v32 = vpop.f32.mrf.mxu0  ;;  %v584_v33 = vpop.f32.mrf.mxu1 }
 0x100   : > { %v448_v34 = vadd.f32 %v447_v32, %v1635_v54  ;;  %v585_v35 = vadd.f32 %v584_v33, %v1637_v55  ;;  %823 = vmatprep.mubr.f32.mxu0 %v634_v27  ;;  %948 = vmatprep.mubr.f32.mxu1 %v636_v28  ;;  %v639_v36 = vmax.f32 %v583_v29, 0.0  ;;  %v637_v42 = vmax.f32 %v446_v31, 0.0 }
 0x101   : > { %v451_v37 = vpop.f32.mrf.mxu0  ;;  %v588_v38 = vpop.f32.mrf.mxu1  ;;  %824 = vmatmul.mubr.f32.gmra.mxu0 %v633_v30  ;;  %949 = vmatmul.mubr.f32.gmra.mxu1 %v635_v24 }
 0x102   : > { %v638_v39 = vmax.f32 %v448_v34, 0.0  ;;  %v640_v40 = vmax.f32 %v585_v35, 0.0  ;;  %v589_v41 = vadd.f32 %v588_v38, %v1631_v52  ;;  %v452_v43 = vadd.f32 %v451_v37, %v1633_v53 }
 0x103   : > { %v453_v44 = vpop.f32.mrf.mxu0  ;;  %v590_v45 = vpop.f32.mrf.mxu1 }
 0x104   : > { %v454_v46 = vadd.f32 %v453_v44, %v1635_v54  ;;  %v591_v47 = vadd.f32 %v590_v45, %v1637_v55  ;;  %828 = vmatprep.mubr.f32.mxu0 %v638_v39  ;;  %953 = vmatprep.mubr.f32.mxu1 %v640_v40  ;;  %v643_v48 = vmax.f32 %v589_v41, 0.0  ;;  %v641_v58 = vmax.f32 %v452_v43, 0.0 }
 0x105   : > { %v457_v49 = vpop.f32.mrf.mxu0  ;;  %v594_v50 = vpop.f32.mrf.mxu1  ;;  %829 = vmatmul.mubr.f32.gmra.mxu0 %v637_v42  ;;  %954 = vmatmul.mubr.f32.gmra.mxu1 %v639_v36 }
 0x106   : > { %v642_v51 = vmax.f32 %v454_v46, 0.0  ;;  %v644_v56 = vmax.f32 %v591_v47, 0.0  ;;  %v595_v57 = vadd.f32 %v594_v50, %v1631_v52  ;;  %v458_v59 = vadd.f32 %v457_v49, %v1633_v53 }
 0x107   : > { %v459_v60 = vpop.f32.mrf.mxu0  ;;  %v596_v61 = vpop.f32.mrf.mxu1 }
 0x108   : > { %v460_v62 = vadd.f32 %v459_v60, %v1635_v54  ;;  %v597_v63 = vadd.f32 %v596_v61, %v1637_v55  ;;  %833 = vmatprep.mubr.f32.mxu0 %v642_v51  ;;  %958 = vmatprep.mubr.f32.mxu1 %v644_v56  ;;  %v647_v0 = vmax.f32 %v595_v57, 0.0  ;;  %v645_v6 = vmax.f32 %v458_v59, 0.0 }
 0x109   : > { %v463_v1 = vpop.f32.mrf.mxu0  ;;  %v600_v2 = vpop.f32.mrf.mxu1  ;;  %834 = vmatmul.mubr.f32.gmra.mxu0 %v641_v58  ;;  %959 = vmatmul.mubr.f32.gmra.mxu1 %v643_v48 }
 0x10a   : > { %v646_v3 = vmax.f32 %v460_v62, 0.0  ;;  %v648_v4 = vmax.f32 %v597_v63, 0.0  ;;  %v601_v5 = vadd.f32 %v600_v2, %v1631_v52  ;;  %v464_v7 = vadd.f32 %v463_v1, %v1633_v53 }
 0x10b   : > { %v465_v8 = vpop.f32.mrf.mxu0  ;;  %v602_v9 = vpop.f32.mrf.mxu1 }
 0x10c   : > { %v466_v10 = vadd.f32 %v465_v8, %v1635_v54  ;;  %v603_v11 = vadd.f32 %v602_v9, %v1637_v55  ;;  %838 = vmatprep.mubr.f32.mxu0 %v646_v3  ;;  %963 = vmatprep.mubr.f32.mxu1 %v648_v4  ;;  %v651_v12 = vmax.f32 %v601_v5, 0.0  ;;  %v649_v15 = vmax.f32 %v464_v7, 0.0  ;;  %v1690_v54 = vld [vmem:[%s1742_s4] ss:$0 sm:$0xff] }
 0x10d   : > { %839 = vmatmul.mubr.f32.gmra.mxu0 %v645_v6  ;;  %964 = vmatmul.mubr.f32.gmra.mxu1 %v647_v0 }
 0x10e   : > { %v650_v13 = vmax.f32 %v466_v10, 0.0  ;;  %v652_v14 = vmax.f32 %v603_v11, 0.0 }
 0x110   : > { %843 = vmatprep.mubr.f32.mxu0 %v650_v13  ;;  %968 = vmatprep.mubr.f32.mxu1 %v652_v14 }
 0x111   : > { %844 = vmatmul.mubr.f32.gmra.mxu0 %v649_v15  ;;  %969 = vmatmul.mubr.f32.gmra.mxu1 %v651_v12 }
 0x1a5   : > { %v1109_v52 = vpop.f32.mrf.mxu0  ;;  %v1177_v53 = vpop.f32.mrf.mxu1 }
 0x1a7   : > { %v1110_v55 = vpop.f32.mrf.mxu0  ;;  %v1178_v16 = vpop.f32.mrf.mxu1 }
 0x1a8   : > { %v1111_v17 = vadd.f32 %v1110_v55, %v1109_v52  ;;  %v1179_v21 = vadd.f32 %v1178_v16, %v1177_v53 }
 0x1a9   : > { %v1112_v18 = vpop.f32.mrf.mxu0  ;;  %v1180_v19 = vpop.f32.mrf.mxu1 }
 0x1aa   : > { %v791_v20 = vadd.f32 %v1111_v17, %v1690_v54 }
 0x1ab   : > { %v1113_v22 = vpop.f32.mrf.mxu0  ;;  %v1181_v23 = vpop.f32.mrf.mxu1 }
 0x1ac   : > { %v916_v24 = vadd.f32 %v1179_v21, %v791_v20  ;;  %v1114_v25 = vadd.f32 %v1113_v22, %v1112_v18  ;;  %v1182_v29 = vadd.f32 %v1181_v23, %v1180_v19 }
 0x1ad   : > { %v1115_v26 = vpop.f32.mrf.mxu0  ;;  %v1183_v27 = vpop.f32.mrf.mxu1 }
 0x1ae   : > { %975 = vst.msk [vmem:[%s1698_s27] sm:$0xff] %vm974_vm1, %v916_v24  ;;  %v796_v28 = vadd.f32 %v1114_v25, %v1690_v54 }
 0x1af   : > { %v1116_v30 = vpop.f32.mrf.mxu0  ;;  %v1184_v31 = vpop.f32.mrf.mxu1 }
 0x1b0   : > { %v921_v32 = vadd.f32 %v1182_v29, %v796_v28  ;;  %v1117_v33 = vadd.f32 %v1116_v30, %v1115_v26  ;;  %v1185_v37 = vadd.f32 %v1184_v31, %v1183_v27 }
 0x1b1   : > { %v1118_v34 = vpop.f32.mrf.mxu0  ;;  %v1186_v35 = vpop.f32.mrf.mxu1 }
 0x1b2   : > { %976 = vst.msk [vmem:[%s1698_s27 + $0x8] sm:$0xff] %vm974_vm1, %v921_v32  ;;  %v801_v36 = vadd.f32 %v1117_v33, %v1690_v54 }
 0x1b3   : > { %v1119_v38 = vpop.f32.mrf.mxu0  ;;  %v1187_v39 = vpop.f32.mrf.mxu1 }
 0x1b4   : > { %v926_v40 = vadd.f32 %v1185_v37, %v801_v36  ;;  %v1120_v41 = vadd.f32 %v1119_v38, %v1118_v34  ;;  %v1188_v45 = vadd.f32 %v1187_v39, %v1186_v35 }
 0x1b5   : > { %v1121_v42 = vpop.f32.mrf.mxu0  ;;  %v1189_v43 = vpop.f32.mrf.mxu1 }
 0x1b6   : > { %977 = vst.msk [vmem:[%s1698_s27 + $0x10] sm:$0xff] %vm974_vm1, %v926_v40  ;;  %v806_v44 = vadd.f32 %v1120_v41, %v1690_v54 }
 0x1b7   : > { %v1122_v46 = vpop.f32.mrf.mxu0  ;;  %v1190_v47 = vpop.f32.mrf.mxu1 }
 0x1b8   : > { %v931_v48 = vadd.f32 %v1188_v45, %v806_v44  ;;  %v1123_v49 = vadd.f32 %v1122_v46, %v1121_v42  ;;  %v1191_v57 = vadd.f32 %v1190_v47, %v1189_v43 }
 0x1b9   : > { %v1124_v50 = vpop.f32.mrf.mxu0  ;;  %v1192_v51 = vpop.f32.mrf.mxu1 }
 0x1ba   : > { %978 = vst.msk [vmem:[%s1698_s27 + $0x18] sm:$0xff] %vm974_vm1, %v931_v48  ;;  %v811_v56 = vadd.f32 %v1123_v49, %v1690_v54 }
 0x1bb   : > { %v1125_v58 = vpop.f32.mrf.mxu0  ;;  %v1193_v59 = vpop.f32.mrf.mxu1 }
 0x1bc   : > { %v936_v60 = vadd.f32 %v1191_v57, %v811_v56  ;;  %v1126_v61 = vadd.f32 %v1125_v58, %v1124_v50  ;;  %v1194_v1 = vadd.f32 %v1193_v59, %v1192_v51 }
 0x1bd   : > { %v1127_v62 = vpop.f32.mrf.mxu0  ;;  %v1195_v63 = vpop.f32.mrf.mxu1 }
 0x1be   : > { %979 = vst.msk [vmem:[%s1698_s27 + $0x20] sm:$0xff] %vm974_vm1, %v936_v60  ;;  %v816_v0 = vadd.f32 %v1126_v61, %v1690_v54 }
 0x1bf   : > { %v1128_v2 = vpop.f32.mrf.mxu0  ;;  %v1196_v3 = vpop.f32.mrf.mxu1 }
 0x1c0   : > { %v941_v4 = vadd.f32 %v1194_v1, %v816_v0  ;;  %v1129_v5 = vadd.f32 %v1128_v2, %v1127_v62  ;;  %v1197_v9 = vadd.f32 %v1196_v3, %v1195_v63 }
 0x1c1   : > { %v1130_v6 = vpop.f32.mrf.mxu0  ;;  %v1198_v7 = vpop.f32.mrf.mxu1 }
 0x1c2   : > { %980 = vst.msk [vmem:[%s1698_s27 + $0x28] sm:$0xff] %vm974_vm1, %v941_v4  ;;  %v821_v8 = vadd.f32 %v1129_v5, %v1690_v54 }
 0x1c3   : > { %v1131_v10 = vpop.f32.mrf.mxu0  ;;  %v1199_v11 = vpop.f32.mrf.mxu1 }
 0x1c4   : > { %v946_v12 = vadd.f32 %v1197_v9, %v821_v8  ;;  %v1132_v13 = vadd.f32 %v1131_v10, %v1130_v6  ;;  %v1200_v53 = vadd.f32 %v1199_v11, %v1198_v7 }
 0x1c5   : > { %v1133_v14 = vpop.f32.mrf.mxu0  ;;  %v1201_v15 = vpop.f32.mrf.mxu1 }
 0x1c6   : > { %981 = vst.msk [vmem:[%s1698_s27 + $0x30] sm:$0xff] %vm974_vm1, %v946_v12  ;;  %v826_v52 = vadd.f32 %v1132_v13, %v1690_v54 }
 0x1c7   : > { %v1134_v55 = vpop.f32.mrf.mxu0  ;;  %v1202_v16 = vpop.f32.mrf.mxu1 }
 0x1c8   : > { %v951_v17 = vadd.f32 %v1200_v53, %v826_v52  ;;  %v1135_v18 = vadd.f32 %v1134_v55, %v1133_v14  ;;  %v1203_v22 = vadd.f32 %v1202_v16, %v1201_v15 }
 0x1c9   : > { %v1136_v19 = vpop.f32.mrf.mxu0  ;;  %v1204_v20 = vpop.f32.mrf.mxu1 }
 0x1ca   : > { %982 = vst.msk [vmem:[%s1698_s27 + $0x38] sm:$0xff] %vm974_vm1, %v951_v17  ;;  %v831_v21 = vadd.f32 %v1135_v18, %v1690_v54 }
 0x1cb   : > { %v1137_v23 = vpop.f32.mrf.mxu0  ;;  %v1205_v24 = vpop.f32.mrf.mxu1 }
 0x1cc   : > { %v956_v25 = vadd.f32 %v1203_v22, %v831_v21  ;;  %v1138_v26 = vadd.f32 %v1137_v23, %v1136_v19  ;;  %v1206_v30 = vadd.f32 %v1205_v24, %v1204_v20 }
 0x1cd   : > { %v1139_v27 = vpop.f32.mrf.mxu0  ;;  %v1207_v28 = vpop.f32.mrf.mxu1 }
 0x1ce   : > { %983 = vst.msk [vmem:[%s1698_s27 + $0x40] sm:$0xff] %vm974_vm1, %v956_v25  ;;  %v836_v29 = vadd.f32 %v1138_v26, %v1690_v54 }
 0x1cf   : > { %v1140_v31 = vpop.f32.mrf.mxu0  ;;  %v1208_v32 = vpop.f32.mrf.mxu1 }
 0x1d0   : > { %v961_v33 = vadd.f32 %v1206_v30, %v836_v29  ;;  %v1141_v34 = vadd.f32 %v1140_v31, %v1139_v27  ;;  %v1209_v38 = vadd.f32 %v1208_v32, %v1207_v28 }
 0x1d1   : > { %v1142_v35 = vpop.f32.mrf.mxu0  ;;  %v1210_v36 = vpop.f32.mrf.mxu1 }
 0x1d2   : > { %984 = vst.msk [vmem:[%s1698_s27 + $0x48] sm:$0xff] %vm974_vm1, %v961_v33  ;;  %v841_v37 = vadd.f32 %v1141_v34, %v1690_v54 }
 0x1d3   : > { %v1143_v39 = vpop.f32.mrf.mxu0  ;;  %v1211_v40 = vpop.f32.mrf.mxu1 }
 0x1d4   : > { %v966_v41 = vadd.f32 %v1209_v38, %v841_v37  ;;  %v1144_v42 = vadd.f32 %v1143_v39, %v1142_v35  ;;  %v1212_v44 = vadd.f32 %v1211_v40, %v1210_v36 }
 0x1d6   : > { %985 = vst.msk [vmem:[%s1698_s27 + $0x50] sm:$0xff] %vm974_vm1, %v966_v41  ;;  %v846_v43 = vadd.f32 %v1144_v42, %v1690_v54 }
 0x1d8   : > { %v971_v45 = vadd.f32 %v1212_v44, %v846_v43 }
 0x1da   : > { %986 = vst.msk [vmem:[%s1698_s27 + $0x58] sm:$0xff] %vm974_vm1, %v971_v45 }
 0x1db PF: > { %s15_s18 = sadd.s32 1, %s1228_s18  }
 0x1dc   : > { %p12_p4 = scmp.ge.s32.totalorder %s15_s18, 6  }
 0x1de   :  { %14 = sbr.rel (!%p12_p4) target bundleno = 1 (0x1), region = 70 }

</bundles_post_ra>
